<compile_context>
chip_gen: v7x
topology: tpu7x:2x2x1
jax: 0.10.0
libtpu: 0.0.40
codegen_flags: <defaults>
</compile_context>

<pallas_src>
import jax
import jax.numpy as jnp
from jax.experimental import pallas as pl
from jax.experimental.pallas import tpu as pltpu


def _round_up(n, m):
    return ((n + m - 1) // m) * m


def _cdiv(a, b):
    return (a + b - 1) // b


# Batch-tile cap: large tiles amortize per-step pipeline overhead and keep the
# 256-wide v6e/v7x MXU fed across the thin (K/N = 128) layers.
_TB_CAP = 1024


# --------------------------------------------------------------------------
# Kernel: 4 chained matmuls (MXU, bf16 in / f32 accumulate) + bias + ReLU.
# BatchNorm is already folded into w/b; Dropout is identity (eval mode).
# --------------------------------------------------------------------------
def _mlp_kernel(x_ref,
                w1_ref, b1_ref,
                w2_ref, b2_ref,
                w3_ref, b3_ref,
                w4_ref, b4_ref,
                o_ref):
    x = x_ref[...].astype(jnp.bfloat16)   # no-op if x is already bf16

    # block 1: Linear(input_dim, 512) [BN folded] + ReLU  (Dropout = identity)
    h = jnp.dot(x, w1_ref[...], preferred_element_type=jnp.float32)
    h = jnp.maximum(h + b1_ref[...], 0.0)

    # block 2: Linear(512, 256) [BN folded] + ReLU  (Dropout = identity)
    h = jnp.dot(h.astype(jnp.bfloat16), w2_ref[...],
                preferred_element_type=jnp.float32)
    h = jnp.maximum(h + b2_ref[...], 0.0)

    # block 3: Linear(256, 128) [BN folded] + ReLU  (Dropout = identity)
    h = jnp.dot(h.astype(jnp.bfloat16), w3_ref[...],
                preferred_element_type=jnp.float32)
    h = jnp.maximum(h + b3_ref[...], 0.0)

    # head: Linear(128, num_classes) (columns zero-padded to 128 = lane-dense)
    out = jnp.dot(h.astype(jnp.bfloat16), w4_ref[...],
                  preferred_element_type=jnp.float32)
    o_ref[...] = (out + b4_ref[...]).astype(o_ref.dtype)


# --------------------------------------------------------------------------
# pallas_call builder (weight buffering mode is a parameter so we can fall
# back to default double-buffering if pl.Buffered(1) is rejected).
# --------------------------------------------------------------------------
def _pallas_forward(x, kp, TB, grid, out_dtype, weight_mode,
                    flops, bytes_accessed, vmem_limit):
    Bp, Dp = x.shape
    H1 = kp["w1"].shape[1]
    H2 = kp["w2"].shape[1]
    H3 = kp["w3"].shape[1]
    Cp = kp["w4"].shape[1]

    vmem = pltpu.MemorySpace.VMEM
    const = lambda i: (0, 0)      # weights/biases resident across batch tiles

    def wspec(shape):
        return pl.BlockSpec(shape, const, memory_space=vmem,
                            pipeline_mode=weight_mode)

    return pl.pallas_call(
        _mlp_kernel,
        out_shape=jax.ShapeDtypeStruct((Bp, Cp), out_dtype),
        grid=grid,
        in_specs=[
            pl.BlockSpec((TB, Dp), lambda i: (i, 0), memory_space=vmem),
            wspec((Dp, H1)), wspec((1, H1)),
            wspec((H1, H2)), wspec((1, H2)),
            wspec((H2, H3)), wspec((1, H3)),
            wspec((H3, Cp)), wspec((1, Cp)),
        ],
        out_specs=pl.BlockSpec((TB, Cp), lambda i: (i, 0), memory_space=vmem),
        compiler_params=pltpu.CompilerParams(
            dimension_semantics=("parallel",),
            vmem_limit_bytes=vmem_limit),
        cost_estimate=pl.CostEstimate(
            flops=flops, transcendentals=0, bytes_accessed=bytes_accessed),
    )(x,
      kp["w1"], kp["b1"],
      kp["w2"], kp["b2"],
      kp["w3"], kp["b3"],
      kp["w4"], kp["b4"])


# --------------------------------------------------------------------------
# Wrapper: padding, batch-tile selection, resident weights, cost estimate.
# --------------------------------------------------------------------------
def kannada_sign_model_forward(x, kp, num_classes, *, out_dtype=jnp.float32):
    """x: (B, input_dim) f32 or bf16.  kp: folded/padded params (fold_and_pack)."""
    B, D = x.shape
    Dp = kp["w1"].shape[0]            # padded input dim (multiple of 128)
    H1 = kp["w1"].shape[1]            # 512
    H2 = kp["w2"].shape[1]            # 256
    H3 = kp["w3"].shape[1]            # 128
    Cp = kp["w4"].shape[1]            # padded num_classes (multiple of 128)

    # Lane-pad features.
    if Dp > D:
        x = jnp.pad(x, ((0, 0), (0, Dp - D)))

    # Batch tiling:
    #  - cap at _TB_CAP (1024) to amortize per-step overhead,
    #  - near-equal tiles so padding waste is <= 7 rows per tile,
    #  - force >= 2 grid steps when B >= 16 so the "parallel" axis can shard
    #    across v7x's two TensorCores (harmless on 1-TC v5e/v6e).
    Bp8 = _round_up(B, 8)
    n_tiles = _cdiv(Bp8, _TB_CAP)
    if Bp8 >= 16:
        n_tiles = max(n_tiles, 2)
    TB = _round_up(_cdiv(Bp8, n_tiles), 8)
    Bp = TB * n_tiles
    if Bp > B:
        x = jnp.pad(x, ((0, Bp - B), (0, 0)))
    grid = (n_tiles,)

    weight_bytes = sum(int(v.size) * v.dtype.itemsize for v in kp.values())
    out_itemsize = jnp.dtype(out_dtype).itemsize
    flops = 2 * Bp * (Dp * H1 + H1 * H2 + H2 * H3 + H3 * Cp)
    bytes_accessed = int(
        Bp * Dp * x.dtype.itemsize        # x (actual on-the-wire dtype)
        + weight_bytes                    # weights/biases (read once)
        + Bp * Cp * out_itemsize)         # output

    # Rough per-step VMEM footprint.  This network never approaches v7x's
    # 64 MiB (no tile shrink there); only raise the scoped limit if we might
    # brush against v5e's 16 MiB default at very large TB / input_dim.
    per_step_bytes = (2 * TB * Dp * x.dtype.itemsize       # x double-buffered
                      + 2 * TB * Cp * out_itemsize          # out double-buffered
                      + 2 * weight_bytes                    # weights (worst case)
                      + 2 * TB * (H1 + H2 + H3) * 4)        # f32/bf16 intermediates
    vmem_limit = 64 * 1024 * 1024 if per_step_bytes > 12 * 1024 * 1024 else None

    # Constant-index weight specs only need a single buffer; fall back to the
    # default pipeline mode if this Pallas version rejects Buffered(1).
    modes = [pl.Buffered(1)] if hasattr(pl, "Buffered") else []
    modes.append(None)
    out = None
    last_err = None
    for mode in modes:
        try:
            out = _pallas_forward(x, kp, TB, grid, out_dtype, mode,
                                  flops, bytes_accessed, vmem_limit)
            break
        except Exception as err:  # fallback path for older/stricter Pallas
            last_err = err
            out = None
    if out is None:
        raise last_err

    return out[:B, :num_classes]


# --------------------------------------------------------------------------
# Parameter construction (synthetic, matches the PyTorch module's shapes).
# Linear weights stored as (in, out) = W_torch.T; BN eval-mode stats folded
# into per-feature scale/shift s, t.
# --------------------------------------------------------------------------
def init_raw_params(key, input_dim, num_classes, eps=1e-5):
    dims = [input_dim, 512, 256, 128, num_classes]
    keys = jax.random.split(key, 32)
    ki = iter(range(32))
    params = {}
    for li in range(4):
        fan_in, fan_out = dims[li], dims[li + 1]
        bound = 1.0 / jnp.sqrt(jnp.float32(fan_in))
        params[f"w{li+1}"] = jax.random.uniform(
            keys[next(ki)], (fan_in, fan_out), jnp.float32, -bound, bound)
        params[f"b{li+1}"] = jax.random.uniform(
            keys[next(ki)], (1, fan_out), jnp.float32, -bound, bound)
    for bi in range(3):
        n = dims[bi + 1]
        gamma = 1.0 + 0.1 * jax.random.normal(keys[next(ki)], (1, n), jnp.float32)
        beta = 0.1 * jax.random.normal(keys[next(ki)], (1, n), jnp.float32)
        rmean = 0.05 * jax.random.normal(keys[next(ki)], (1, n), jnp.float32)
        rvar = 1.0 + 0.1 * jax.random.uniform(keys[next(ki)], (1, n), jnp.float32)
        scale = gamma / jnp.sqrt(rvar + eps)
        shift = beta - rmean * scale
        params[f"s{bi+1}"] = scale
        params[f"t{bi+1}"] = shift
    return params


def fold_and_pack(raw, input_dim, num_classes):
    """Fold eval-mode BN into the linears, pad to lane-aligned shapes, cast
    weights to bf16 (biases stay f32)."""
    Dp = _round_up(input_dim, 128)
    Cp = _round_up(num_classes, 128)
    p = {}
    for i in (1, 2, 3):
        w = raw[f"w{i}"] * raw[f"s{i}"]                    # (in,out) * (1,out)
        b = raw[f"b{i}"] * raw[f"s{i}"] + raw[f"t{i}"]
        if i == 1 and Dp > input_dim:
            w = jnp.pad(w, ((0, Dp - input_dim), (0, 0)))  # zero-pad contraction rows
        p[f"w{i}"] = w.astype(jnp.bfloat16)
        p[f"b{i}"] = b.astype(jnp.float32)
    w4, b4 = raw["w4"], raw["b4"]
    if Cp > num_classes:
        w4 = jnp.pad(w4, ((0, 0), (0, Cp - num_classes)))
        b4 = jnp.pad(b4, ((0, 0), (0, Cp - num_classes)))
    p["w4"] = w4.astype(jnp.bfloat16)
    p["b4"] = b4.astype(jnp.float32)
    return p


# --------------------------------------------------------------------------
# References for verification.
# --------------------------------------------------------------------------
def _reference_matched(x, kp, num_classes):
    """Same numerics as the kernel: bf16-rounded matmul inputs, f32 accumulate."""
    Dp = kp["w1"].shape[0]
    if Dp > x.shape[1]:
        x = jnp.pad(x, ((0, 0), (0, Dp - x.shape[1])))
    bf = lambda a: a.astype(jnp.bfloat16).astype(jnp.float32)
    h = jnp.maximum(bf(x) @ bf(kp["w1"]) + kp["b1"], 0.0)
    h = jnp.maximum(bf(h) @ bf(kp["w2"]) + kp["b2"], 0.0)
    h = jnp.maximum(bf(h) @ bf(kp["w3"]) + kp["b3"], 0.0)
    out = bf(h) @ bf(kp["w4"]) + kp["b4"]
    return out[:, :num_classes]


def _reference_f32_unfolded(x, p):
    """Plain f32, un-folded eval-mode module semantics (Linear -> BN -> ReLU)."""
    h = jnp.maximum((x @ p["w1"] + p["b1"]) * p["s1"] + p["t1"], 0.0)
    h = jnp.maximum((h @ p["w2"] + p["b2"]) * p["s2"] + p["t2"], 0.0)
    h = jnp.maximum((h @ p["w3"] + p["b3"]) * p["s3"] + p["t3"], 0.0)
    return h @ p["w4"] + p["b4"]


if __name__ == "__main__":
    key = jax.random.PRNGKey(0)
    k_x, k_p = jax.random.split(key)

    batch = 32              # exercises the >=2-tile grid path
    input_dim = 64          # e.g. flattened hand-landmark features
    num_classes = 16        # synthetic Kannada-sign class count

    x = jax.random.normal(k_x, (batch, input_dim), jnp.float32)
    raw = init_raw_params(k_p, input_dim, num_classes)
    kp = fold_and_pack(raw, input_dim, num_classes)

    out = kannada_sign_model_forward(x, kp, num_classes)
    out = jax.block_until_ready(out)
    assert out.shape == (batch, num_classes)

    # Exact-semantics check against a reference with identical bf16 rounding.
    ref = _reference_matched(x, kp, num_classes)
    assert jnp.allclose(out, ref, atol=1e-2, rtol=1e-2), float(jnp.max(jnp.abs(out - ref)))

    # Module-semantics check (pure f32, un-folded BN): loose tol for bf16 weights.
    ref_f32 = _reference_f32_unfolded(x, raw)
    assert jnp.allclose(out, ref_f32, atol=5e-2, rtol=5e-2), float(jnp.max(jnp.abs(out - ref_f32)))

    print("KERNEL_OK")
</pallas_src>

<mosaic_0001>
module attributes {stable_mosaic.version = 11 : i64} {
  func.func @_mlp_kernel(%arg0: i32, %arg1: memref<16x128xf32, #tpu.memory_space<vmem>>, %arg2: memref<128x512xbf16, #tpu.memory_space<vmem>>, %arg3: memref<1x512xf32, #tpu.memory_space<vmem>>, %arg4: memref<512x256xbf16, #tpu.memory_space<vmem>>, %arg5: memref<1x256xf32, #tpu.memory_space<vmem>>, %arg6: memref<256x128xbf16, #tpu.memory_space<vmem>>, %arg7: memref<1x128xf32, #tpu.memory_space<vmem>>, %arg8: memref<128x128xbf16, #tpu.memory_space<vmem>>, %arg9: memref<1x128xf32, #tpu.memory_space<vmem>>, %arg10: memref<16x128xf32, #tpu.memory_space<vmem>>) attributes {dimension_semantics = [#tpu.dimension_semantics<parallel>], iteration_bounds = array<i64: 2>, scalar_prefetch = 0 : i64, scratch_operands = 0 : i64, tpu.core_type = #tpu.core_type<tc>, window_params = [{transform_indices = @transform_0, window_bounds = array<i64: 16, 128>}, {pipeline_mode = #tpu.pipeline_mode<synchronous>, transform_indices = @transform_1, window_bounds = array<i64: 128, 512>}, {pipeline_mode = #tpu.pipeline_mode<synchronous>, transform_indices = @transform_2, window_bounds = array<i64: 1, 512>}, {pipeline_mode = #tpu.pipeline_mode<synchronous>, transform_indices = @transform_3, window_bounds = array<i64: 512, 256>}, {pipeline_mode = #tpu.pipeline_mode<synchronous>, transform_indices = @transform_4, window_bounds = array<i64: 1, 256>}, {pipeline_mode = #tpu.pipeline_mode<synchronous>, transform_indices = @transform_5, window_bounds = array<i64: 256, 128>}, {pipeline_mode = #tpu.pipeline_mode<synchronous>, transform_indices = @transform_6, window_bounds = array<i64: 1, 128>}, {pipeline_mode = #tpu.pipeline_mode<synchronous>, transform_indices = @transform_7, window_bounds = array<i64: 128, 128>}, {pipeline_mode = #tpu.pipeline_mode<synchronous>, transform_indices = @transform_8, window_bounds = array<i64: 1, 128>}, {transform_indices = @transform_9, window_bounds = array<i64: 16, 128>}]} {
    %c0 = arith.constant 0 : index
    %c0_0 = arith.constant 0 : index
    %0 = vector.load %arg1[%c0, %c0_0] : memref<16x128xf32, #tpu.memory_space<vmem>>, vector<16x128xf32>
    %1 = arith.truncf %0 : vector<16x128xf32> to vector<16x128xbf16>
    %c0_1 = arith.constant 0 : index
    %c0_2 = arith.constant 0 : index
    %2 = vector.load %arg2[%c0_1, %c0_2] : memref<128x512xbf16, #tpu.memory_space<vmem>>, vector<128x512xbf16>
    %cst = arith.constant dense<0.000000e+00> : vector<16x512xf32>
    %3 = tpu.matmul %1, %2, %cst {dimension_numbers = #tpu.dot_dimension_numbers<[1], [0], [0], [1], [0, 0, 1, 1], [], []>} : vector<16x128xbf16>, vector<128x512xbf16>, vector<16x512xf32> -> vector<16x512xf32>
    %c0_3 = arith.constant 0 : index
    %c0_4 = arith.constant 0 : index
    %4 = vector.load %arg3[%c0_3, %c0_4] : memref<1x512xf32, #tpu.memory_space<vmem>>, vector<1x512xf32>
    %5 = vector.broadcast %4 : vector<1x512xf32> to vector<16x512xf32>
    %6 = arith.addf %3, %5 : vector<16x512xf32>
    %cst_5 = arith.constant 0.000000e+00 : f32
    %7 = vector.broadcast %cst_5 : f32 to vector<16x512xf32>
    %8 = arith.maximumf %6, %7 : vector<16x512xf32>
    %9 = arith.truncf %8 : vector<16x512xf32> to vector<16x512xbf16>
    %c0_6 = arith.constant 0 : index
    %c0_7 = arith.constant 0 : index
    %10 = vector.load %arg4[%c0_6, %c0_7] : memref<512x256xbf16, #tpu.memory_space<vmem>>, vector<512x256xbf16>
    %cst_8 = arith.constant dense<0.000000e+00> : vector<16x256xf32>
    %11 = tpu.matmul %9, %10, %cst_8 {dimension_numbers = #tpu.dot_dimension_numbers<[1], [0], [0], [1], [0, 0, 1, 1], [], []>} : vector<16x512xbf16>, vector<512x256xbf16>, vector<16x256xf32> -> vector<16x256xf32>
    %c0_9 = arith.constant 0 : index
    %c0_10 = arith.constant 0 : index
    %12 = vector.load %arg5[%c0_9, %c0_10] : memref<1x256xf32, #tpu.memory_space<vmem>>, vector<1x256xf32>
    %13 = vector.broadcast %12 : vector<1x256xf32> to vector<16x256xf32>
    %14 = arith.addf %11, %13 : vector<16x256xf32>
    %cst_11 = arith.constant 0.000000e+00 : f32
    %15 = vector.broadcast %cst_11 : f32 to vector<16x256xf32>
    %16 = arith.maximumf %14, %15 : vector<16x256xf32>
    %17 = arith.truncf %16 : vector<16x256xf32> to vector<16x256xbf16>
    %c0_12 = arith.constant 0 : index
    %c0_13 = arith.constant 0 : index
    %18 = vector.load %arg6[%c0_12, %c0_13] : memref<256x128xbf16, #tpu.memory_space<vmem>>, vector<256x128xbf16>
    %cst_14 = arith.constant dense<0.000000e+00> : vector<16x128xf32>
    %19 = tpu.matmul %17, %18, %cst_14 {dimension_numbers = #tpu.dot_dimension_numbers<[1], [0], [0], [1], [0, 0, 1, 1], [], []>} : vector<16x256xbf16>, vector<256x128xbf16>, vector<16x128xf32> -> vector<16x128xf32>
    %c0_15 = arith.constant 0 : index
    %c0_16 = arith.constant 0 : index
    %20 = vector.load %arg7[%c0_15, %c0_16] : memref<1x128xf32, #tpu.memory_space<vmem>>, vector<1x128xf32>
    %21 = vector.broadcast %20 : vector<1x128xf32> to vector<16x128xf32>
    %22 = arith.addf %19, %21 : vector<16x128xf32>
    %cst_17 = arith.constant 0.000000e+00 : f32
    %23 = vector.broadcast %cst_17 : f32 to vector<16x128xf32>
    %24 = arith.maximumf %22, %23 : vector<16x128xf32>
    %25 = arith.truncf %24 : vector<16x128xf32> to vector<16x128xbf16>
    %c0_18 = arith.constant 0 : index
    %c0_19 = arith.constant 0 : index
    %26 = vector.load %arg8[%c0_18, %c0_19] : memref<128x128xbf16, #tpu.memory_space<vmem>>, vector<128x128xbf16>
    %cst_20 = arith.constant dense<0.000000e+00> : vector<16x128xf32>
    %27 = tpu.matmul %25, %26, %cst_20 {dimension_numbers = #tpu.dot_dimension_numbers<[1], [0], [0], [1], [0, 0, 1, 1], [], []>} : vector<16x128xbf16>, vector<128x128xbf16>, vector<16x128xf32> -> vector<16x128xf32>
    %c0_21 = arith.constant 0 : index
    %c0_22 = arith.constant 0 : index
    %28 = vector.load %arg9[%c0_21, %c0_22] : memref<1x128xf32, #tpu.memory_space<vmem>>, vector<1x128xf32>
    %29 = vector.broadcast %28 : vector<1x128xf32> to vector<16x128xf32>
    %30 = arith.addf %27, %29 : vector<16x128xf32>
    %c0_23 = arith.constant 0 : index
    %c0_24 = arith.constant 0 : index
    %31 = vector.load %arg10[%c0_23, %c0_24] : memref<16x128xf32, #tpu.memory_space<vmem>>, vector<16x128xf32>
    tpu.vector_store %arg10[%c0_23, %c0_24], %30 {strides = array<i32>} : memref<16x128xf32, #tpu.memory_space<vmem>>, vector<16x128xf32>,
    return
  }
  func.func @transform_0(%arg0: i32) -> (i32, i32) {
    %c0_i32 = arith.constant 0 : i32
    %c0_i32_0 = arith.constant 0 : i32
    return %arg0, %c0_i32 : i32, i32
  }
  func.func @transform_1(%arg0: i32) -> (i32, i32) {
    %c0_i32 = arith.constant 0 : i32
    %c0_i32_0 = arith.constant 0 : i32
    %c0_i32_1 = arith.constant 0 : i32
    return %c0_i32, %c0_i32_0 : i32, i32
  }
  func.func @transform_2(%arg0: i32) -> (i32, i32) {
    %c0_i32 = arith.constant 0 : i32
    %c0_i32_0 = arith.constant 0 : i32
    %c0_i32_1 = arith.constant 0 : i32
    return %c0_i32, %c0_i32_0 : i32, i32
  }
  func.func @transform_3(%arg0: i32) -> (i32, i32) {
    %c0_i32 = arith.constant 0 : i32
    %c0_i32_0 = arith.constant 0 : i32
    %c0_i32_1 = arith.constant 0 : i32
    return %c0_i32, %c0_i32_0 : i32, i32
  }
  func.func @transform_4(%arg0: i32) -> (i32, i32) {
    %c0_i32 = arith.constant 0 : i32
    %c0_i32_0 = arith.constant 0 : i32
    %c0_i32_1 = arith.constant 0 : i32
    return %c0_i32, %c0_i32_0 : i32, i32
  }
  func.func @transform_5(%arg0: i32) -> (i32, i32) {
    %c0_i32 = arith.constant 0 : i32
    %c0_i32_0 = arith.constant 0 : i32
    %c0_i32_1 = arith.constant 0 : i32
    return %c0_i32, %c0_i32_0 : i32, i32
  }
  func.func @transform_6(%arg0: i32) -> (i32, i32) {
    %c0_i32 = arith.constant 0 : i32
    %c0_i32_0 = arith.constant 0 : i32
    %c0_i32_1 = arith.constant 0 : i32
    return %c0_i32, %c0_i32_0 : i32, i32
  }
  func.func @transform_7(%arg0: i32) -> (i32, i32) {
    %c0_i32 = arith.constant 0 : i32
    %c0_i32_0 = arith.constant 0 : i32
    %c0_i32_1 = arith.constant 0 : i32
    return %c0_i32, %c0_i32_0 : i32, i32
  }
  func.func @transform_8(%arg0: i32) -> (i32, i32) {
    %c0_i32 = arith.constant 0 : i32
    %c0_i32_0 = arith.constant 0 : i32
    %c0_i32_1 = arith.constant 0 : i32
    return %c0_i32, %c0_i32_0 : i32, i32
  }
  func.func @transform_9(%arg0: i32) -> (i32, i32) {
    %c0_i32 = arith.constant 0 : i32
    %c0_i32_0 = arith.constant 0 : i32
    return %arg0, %c0_i32 : i32, i32
  }
}

module attributes {stable_mosaic.version = 11 : i64} {
  func.func @_mlp_kernel(%arg0: i32, %arg1: memref<16x128xf32, #tpu.memory_space<vmem>>, %arg2: memref<128x512xbf16, #tpu.memory_space<vmem>>, %arg3: memref<1x512xf32, #tpu.memory_space<vmem>>, %arg4: memref<512x256xbf16, #tpu.memory_space<vmem>>, %arg5: memref<1x256xf32, #tpu.memory_space<vmem>>, %arg6: memref<256x128xbf16, #tpu.memory_space<vmem>>, %arg7: memref<1x128xf32, #tpu.memory_space<vmem>>, %arg8: memref<128x128xbf16, #tpu.memory_space<vmem>>, %arg9: memref<1x128xf32, #tpu.memory_space<vmem>>, %arg10: memref<16x128xf32, #tpu.memory_space<vmem>>) attributes {dimension_semantics = [#tpu.dimension_semantics<parallel>], iteration_bounds = array<i64: 2>, scalar_prefetch = 0 : i64, scratch_operands = 0 : i64, tpu.core_type = #tpu.core_type<tc>, window_params = [{transform_indices = @transform_0, window_bounds = array<i64: 16, 128>}, {pipeline_mode = #tpu.pipeline_mode<synchronous>, transform_indices = @transform_1, window_bounds = array<i64: 128, 512>}, {pipeline_mode = #tpu.pipeline_mode<synchronous>, transform_indices = @transform_2, window_bounds = array<i64: 1, 512>}, {pipeline_mode = #tpu.pipeline_mode<synchronous>, transform_indices = @transform_3, window_bounds = array<i64: 512, 256>}, {pipeline_mode = #tpu.pipeline_mode<synchronous>, transform_indices = @transform_4, window_bounds = array<i64: 1, 256>}, {pipeline_mode = #tpu.pipeline_mode<synchronous>, transform_indices = @transform_5, window_bounds = array<i64: 256, 128>}, {pipeline_mode = #tpu.pipeline_mode<synchronous>, transform_indices = @transform_6, window_bounds = array<i64: 1, 128>}, {pipeline_mode = #tpu.pipeline_mode<synchronous>, transform_indices = @transform_7, window_bounds = array<i64: 128, 128>}, {pipeline_mode = #tpu.pipeline_mode<synchronous>, transform_indices = @transform_8, window_bounds = array<i64: 1, 128>}, {transform_indices = @transform_9, window_bounds = array<i64: 16, 128>}]} {
    %c0 = arith.constant 0 : index
    %c0_0 = arith.constant 0 : index
    %0 = vector.load %arg1[%c0, %c0_0] : memref<16x128xf32, #tpu.memory_space<vmem>>, vector<16x128xf32>
    %1 = arith.truncf %0 : vector<16x128xf32> to vector<16x128xbf16>
    %c0_1 = arith.constant 0 : index
    %c0_2 = arith.constant 0 : index
    %2 = vector.load %arg2[%c0_1, %c0_2] : memref<128x512xbf16, #tpu.memory_space<vmem>>, vector<128x512xbf16>
    %cst = arith.constant dense<0.000000e+00> : vector<16x512xf32>
    %3 = tpu.matmul %1, %2, %cst {dimension_numbers = #tpu.dot_dimension_numbers<[1], [0], [0], [1], [0, 0, 1, 1], [], []>} : vector<16x128xbf16>, vector<128x512xbf16>, vector<16x512xf32> -> vector<16x512xf32>
    %c0_3 = arith.constant 0 : index
    %c0_4 = arith.constant 0 : index
    %4 = vector.load %arg3[%c0_3, %c0_4] : memref<1x512xf32, #tpu.memory_space<vmem>>, vector<1x512xf32>
    %5 = vector.broadcast %4 : vector<1x512xf32> to vector<16x512xf32>
    %6 = arith.addf %3, %5 : vector<16x512xf32>
    %cst_5 = arith.constant 0.000000e+00 : f32
    %7 = vector.broadcast %cst_5 : f32 to vector<16x512xf32>
    %8 = arith.maximumf %6, %7 : vector<16x512xf32>
    %9 = arith.truncf %8 : vector<16x512xf32> to vector<16x512xbf16>
    %c0_6 = arith.constant 0 : index
    %c0_7 = arith.constant 0 : index
    %10 = vector.load %arg4[%c0_6, %c0_7] : memref<512x256xbf16, #tpu.memory_space<vmem>>, vector<512x256xbf16>
    %cst_8 = arith.constant dense<0.000000e+00> : vector<16x256xf32>
    %11 = tpu.matmul %9, %10, %cst_8 {dimension_numbers = #tpu.dot_dimension_numbers<[1], [0], [0], [1], [0, 0, 1, 1], [], []>} : vector<16x512xbf16>, vector<512x256xbf16>, vector<16x256xf32> -> vector<16x256xf32>
    %c0_9 = arith.constant 0 : index
    %c0_10 = arith.constant 0 : index
    %12 = vector.load %arg5[%c0_9, %c0_10] : memref<1x256xf32, #tpu.memory_space<vmem>>, vector<1x256xf32>
    %13 = vector.broadcast %12 : vector<1x256xf32> to vector<16x256xf32>
    %14 = arith.addf %11, %13 : vector<16x256xf32>
    %cst_11 = arith.constant 0.000000e+00 : f32
    %15 = vector.broadcast %cst_11 : f32 to vector<16x256xf32>
    %16 = arith.maximumf %14, %15 : vector<16x256xf32>
    %17 = arith.truncf %16 : vector<16x256xf32> to vector<16x256xbf16>
    %c0_12 = arith.constant 0 : index
    %c0_13 = arith.constant 0 : index
    %18 = vector.load %arg6[%c0_12, %c0_13] : memref<256x128xbf16, #tpu.memory_space<vmem>>, vector<256x128xbf16>
    %cst_14 = arith.constant dense<0.000000e+00> : vector<16x128xf32>
    %19 = tpu.matmul %17, %18, %cst_14 {dimension_numbers = #tpu.dot_dimension_numbers<[1], [0], [0], [1], [0, 0, 1, 1], [], []>} : vector<16x256xbf16>, vector<256x128xbf16>, vector<16x128xf32> -> vector<16x128xf32>
    %c0_15 = arith.constant 0 : index
    %c0_16 = arith.constant 0 : index
    %20 = vector.load %arg7[%c0_15, %c0_16] : memref<1x128xf32, #tpu.memory_space<vmem>>, vector<1x128xf32>
    %21 = vector.broadcast %20 : vector<1x128xf32> to vector<16x128xf32>
    %22 = arith.addf %19, %21 : vector<16x128xf32>
    %cst_17 = arith.constant 0.000000e+00 : f32
    %23 = vector.broadcast %cst_17 : f32 to vector<16x128xf32>
    %24 = arith.maximumf %22, %23 : vector<16x128xf32>
    %25 = arith.truncf %24 : vector<16x128xf32> to vector<16x128xbf16>
    %c0_18 = arith.constant 0 : index
    %c0_19 = arith.constant 0 : index
    %26 = vector.load %arg8[%c0_18, %c0_19] : memref<128x128xbf16, #tpu.memory_space<vmem>>, vector<128x128xbf16>
    %cst_20 = arith.constant dense<0.000000e+00> : vector<16x128xf32>
    %27 = tpu.matmul %25, %26, %cst_20 {dimension_numbers = #tpu.dot_dimension_numbers<[1], [0], [0], [1], [0, 0, 1, 1], [], []>} : vector<16x128xbf16>, vector<128x128xbf16>, vector<16x128xf32> -> vector<16x128xf32>
    %c0_21 = arith.constant 0 : index
    %c0_22 = arith.constant 0 : index
    %28 = vector.load %arg9[%c0_21, %c0_22] : memref<1x128xf32, #tpu.memory_space<vmem>>, vector<1x128xf32>
    %29 = vector.broadcast %28 : vector<1x128xf32> to vector<16x128xf32>
    %30 = arith.addf %27, %29 : vector<16x128xf32>
    %c0_23 = arith.constant 0 : index
    %c0_24 = arith.constant 0 : index
    %31 = vector.load %arg10[%c0_23, %c0_24] : memref<16x128xf32, #tpu.memory_space<vmem>>, vector<16x128xf32>
    tpu.vector_store %arg10[%c0_23, %c0_24], %30 {strides = array<i32>} : memref<16x128xf32, #tpu.memory_space<vmem>>, vector<16x128xf32>,
    return
  }
  func.func @transform_0(%arg0: i32) -> (i32, i32) {
    %c0_i32 = arith.constant 0 : i32
    %c0_i32_0 = arith.constant 0 : i32
    return %arg0, %c0_i32 : i32, i32
  }
  func.func @transform_1(%arg0: i32) -> (i32, i32) {
    %c0_i32 = arith.constant 0 : i32
    %c0_i32_0 = arith.constant 0 : i32
    %c0_i32_1 = arith.constant 0 : i32
    return %c0_i32, %c0_i32_0 : i32, i32
  }
  func.func @transform_2(%arg0: i32) -> (i32, i32) {
    %c0_i32 = arith.constant 0 : i32
    %c0_i32_0 = arith.constant 0 : i32
    %c0_i32_1 = arith.constant 0 : i32
    return %c0_i32, %c0_i32_0 : i32, i32
  }
  func.func @transform_3(%arg0: i32) -> (i32, i32) {
    %c0_i32 = arith.constant 0 : i32
    %c0_i32_0 = arith.constant 0 : i32
    %c0_i32_1 = arith.constant 0 : i32
    return %c0_i32, %c0_i32_0 : i32, i32
  }
  func.func @transform_4(%arg0: i32) -> (i32, i32) {
    %c0_i32 = arith.constant 0 : i32
    %c0_i32_0 = arith.constant 0 : i32
    %c0_i32_1 = arith.constant 0 : i32
    return %c0_i32, %c0_i32_0 : i32, i32
  }
  func.func @transform_5(%arg0: i32) -> (i32, i32) {
    %c0_i32 = arith.constant 0 : i32
    %c0_i32_0 = arith.constant 0 : i32
    %c0_i32_1 = arith.constant 0 : i32
    return %c0_i32, %c0_i32_0 : i32, i32
  }
  func.func @transform_6(%arg0: i32) -> (i32, i32) {
    %c0_i32 = arith.constant 0 : i32
    %c0_i32_0 = arith.constant 0 : i32
    %c0_i32_1 = arith.constant 0 : i32
    return %c0_i32, %c0_i32_0 : i32, i32
  }
  func.func @transform_7(%arg0: i32) -> (i32, i32) {
    %c0_i32 = arith.constant 0 : i32
    %c0_i32_0 = arith.constant 0 : i32
    %c0_i32_1 = arith.constant 0 : i32
    return %c0_i32, %c0_i32_0 : i32, i32
  }
  func.func @transform_8(%arg0: i32) -> (i32, i32) {
    %c0_i32 = arith.constant 0 : i32
    %c0_i32_0 = arith.constant 0 : i32
    %c0_i32_1 = arith.constant 0 : i32
    return %c0_i32, %c0_i32_0 : i32, i32
  }
  func.func @transform_9(%arg0: i32) -> (i32, i32) {
    %c0_i32 = arith.constant 0 : i32
    %c0_i32_0 = arith.constant 0 : i32
    return %arg0, %c0_i32 : i32, i32
  }
}

</mosaic_0001>

<bundles_post_ra>
// kernel: tpu_custom_call.1
= control target key start
LH: loop header
LB: loop body
LE: loop exit
PB: predicated region body
PF: predicated region fallthrough
CT: control target
= control target key end

     0   :  { %s2713_s0 = inlined_call_operand.hbm [shape: f32[32,128], index: 0, kind: input, shape index: {}]   ;;  %s2714_s1 = inlined_call_operand.hbm [shape: bf16[128,512], index: 1, kind: input, shape index: {}]   ;;  %s2715_s2 = inlined_call_operand.vmem [shape: f32[1,512], index: 2, kind: input, shape index: {}]   ;;  %s2716_s3 = inlined_call_operand.hbm [shape: bf16[512,256], index: 3, kind: input, shape index: {}]   ;;  %s2717_s4 = inlined_call_operand.vmem [shape: f32[1,256], index: 4, kind: input, shape index: {}]   ;;  %s2718_s5 = inlined_call_operand.hbm [shape: bf16[256,128], index: 5, kind: input, shape index: {}]   ;;  %s2719_s6 = inlined_call_operand.vmem [shape: f32[1,128], index: 6, kind: input, shape index: {}]   ;;  %s2720_s7 = inlined_call_operand.hbm [shape: bf16[128,128], index: 7, kind: input, shape index: {}]   ;;  %s2721_s8 = inlined_call_operand.vmem [shape: f32[1,128], index: 8, kind: input, shape index: {}]   ;;  %s2722_s9 = inlined_call_operand.hbm [shape: f32[32,128], index: 9, kind: output, shape index: {}]  }
   0x1   :  { %2730 = sst [smem:[#allocation18_spill]] %s2714_s1 }
   0x2   :  { %14 = vsyncpa [#allocation3], 0 }
   0x3   :  { %16 = vsyncpa [#allocation3 + $0x1], 0 }
   0x4   :  { %17 = vsyncpa [#allocation6], 0 }
   0x5   :  { %18 = vsyncpa [#allocation9], 0 }
   0x6   :  { %19 = vsyncpa [#allocation4], 0 }
   0x7   :  { %21 = vsyncpa [#allocation4 + $0x1], 0  ;;  %s2389_s30 = smov 0   ;;  %s2391_s10 = smov 0  }
   0x8   :  { %s2393_s11 = smov 0   ;;  %s2395_s12 = smov 0  }
   0x9 LB: > { %2731 = sst [smem:[#allocation16_spill]] %s2308_s30  ;;  %s2410_s13 = sadd.s32 4294967295, %s2320_s12   ;;  %s2320_s12 = sphi %s2395_s12, %s2757_s12   ;;  %s2316_s11 = sphi %s2393_s11, %s2756_s11   ;;  %s2312_s10 = sphi %s2391_s10, %s2755_s10   ;;  %s2308_s30 = sphi %s2389_s30, %s2754_s30  }
   0xa   : > { %s1633_s14 = sadd.s32 4294967294, %s2320_s12   ;;  %p47_p0 = scmp.ne.s32.totalorder %s2312_s10, %s2308_s30 }
   0xb   : > { %p2723_p1 = scmp.eq.s32.totalorder %s2410_s13, 0  ;;  %p245_p3 = scmp.eq.s32.totalorder %s1633_s14, 1 }
   0xc   : > { %p1634_p5 = scmp.ge.s32.totalorder %s2320_s12, 1  ;;  %p252_p7 = scmp.lt.s32.totalorder %s2320_s12, 3 }
   0xd   : > { %p2419_p4 = por %p2723_p1, %p47_p0  ;;  %p2424_p6 = por %p245_p3, %p47_p0 }
   0xe   : > { %p2429_p8 = pnand %p1634_p5, %p252_p7  ;;  %s2322_s18 = smov [#allocation5]  }
   0xf   : > { %s2732_s15 = scalar_select %p2419_p4, 1, 0 }
  0x10   : > { %s2733_s16 = scalar_select %p2424_p6, 1, 0 }
  0x11   : > { %s2735_s17 = scalar_select %p2429_p8, 1, 0 }
  0x12   : > { %2734 = sst [smem:[#allocation17_spill]] %s2733_s16  ;;  %s264_s19 = sshll.u32 %s2322_s18, 4  ;;  %s2433_s19 = int_to_ptr.vmem [resolvable:$true] %s264_s19 }
  0x13   : > { %p1858_p9 = pneg %p2429_p8  ;;  %s2323_s21 = smov [#allocation8]  }
  0x14   : > { %s296_s22 = sshll.u32 %s2323_s21, 4  ;;  %s2737_s1 = sld [smem:[#allocation18_spill]]  ;;  %s2444_s22 = int_to_ptr.vmem [resolvable:$true] %s296_s22 }
  0x15   : > { %p2440_p11 = pnand %p1858_p9, %p2723_p1 }
  0x17   : > { %p2454_p13 = pneg %p2440_p11 }
  0x1a   : > { %s2104_s25 = scalar_lea.hbm %s2737_s1, 4096 }
  0x1b   : > { %p2105_p12 = scmp.ne.s32.totalorder %s2737_s1, %s2104_s25  ;;  %p2111_p5 = scmp.lt.u32.totalorder %s2104_s25, %s2737_s1 }
  0x1d   : > { %p2107_p0 = pnand %p2454_p13, %p2105_p12 }
  0x1f   : > { %p2108_p3 = pneg %p2107_p0 }
  0x21   : > { %p2113_p7 = pnand %p2111_p5, %p2108_p3 }
  0x23   : > { %2116 = shalt.err (!%p2113_p7)
}
  0x24   : > { %s2117_s18 = scalar_lea.vmem %s2433_s19, 4096  ;;  %p2125_p2 = scmp.lt.s32.totalorder %s2433_s19, %s2433_s19 }
  0x25   : > { %p2118_p9 = scmp.ne.s32.totalorder %s2433_s19, %s2117_s18  ;;  %p2126_p6 = scmp.lt.s32.totalorder %s2117_s18, %s2117_s18 }
  0x27   : > { %p2120_p10 = pnand %p2118_p9, %p2454_p13  ;;  %p2127_p12 = por %p2126_p6, %p2125_p2 }
  0x29   : > { %p2121_p1 = pneg %p2120_p10 }
  0x2b   : > { %p2128_p0 = pnand %p2127_p12, %p2121_p1 }
  0x2d   : > { %2131 = shalt.err (!%p2128_p0)
}
  0x2e   : > { %s2324_s21 = smov 256   ;;  %s2325_s23 = smov 16  }
  0x2f   : > { %1861 = dma.hbm_to_vmem [thread:$0]  (!%p2440_p11), %s2737_s1, 4096, %s2433_s19, [#allocation6], %s2324_s21, %s2324_s21, %s2325_s23  }
  0x30   : > { %s2132_s29 = scalar_lea.hbm %s2718_s5, 2048 }
  0x31   : > { %p2133_p2 = scmp.ne.s32.totalorder %s2718_s5, %s2132_s29  ;;  %p2139_p10 = scmp.lt.u32.totalorder %s2132_s29, %s2718_s5 }
  0x33   : > { %p2135_p1 = pnand %p2133_p2, %p2454_p13 }
  0x35   : > { %p2136_p6 = pneg %p2135_p1 }
  0x37   : > { %p2141_p3 = pnand %p2139_p10, %p2136_p6 }
  0x39   : > { %2144 = shalt.err (!%p2141_p3)
}
  0x3a   : > { %s2145_s19 = scalar_lea.vmem %s2444_s22, 2048  ;;  %p2153_p12 = scmp.lt.s32.totalorder %s2444_s22, %s2444_s22 }
  0x3b   : > { %p2146_p5 = scmp.ne.s32.totalorder %s2444_s22, %s2145_s19  ;;  %p2154_p0 = scmp.lt.s32.totalorder %s2145_s19, %s2145_s19 }
  0x3d   : > { %p2148_p7 = pnand %p2146_p5, %p2454_p13  ;;  %p2155_p2 = por %p2154_p0, %p2153_p12 }
  0x3f   : > { %p2149_p9 = pneg %p2148_p7 }
  0x41   : > { %p2156_p1 = pnand %p2155_p2, %p2149_p9 }
  0x43   : > { %2159 = shalt.err (!%p2156_p1)
}
  0x44   : > { %s2728_s16 = smov 64   ;;  %s2729_s30 = smov 4  }
  0x45   : > { %1867 = dma.hbm_to_vmem [thread:$0]  (!%p2440_p11), %s2718_s5, 2048, %s2444_s22, [#allocation9], %s2728_s16, %s2728_s16, %s2729_s30  }
  0x46   : > { %s2328_s24 = smov [#allocation7]   ;;  %s2160_s29 = scalar_lea.hbm %s2716_s3, 8192 }
  0x47   : > { %s280_s25 = sshll.u32 %s2328_s24, 4  ;;  %p2161_p6 = scmp.ne.s32.totalorder %s2716_s3, %s2160_s29  ;;  %s281_s25 = int_to_ptr.vmem [resolvable:$true] %s280_s25 }
  0x48   : > { %p2167_p5 = scmp.lt.u32.totalorder %s2160_s29, %s2716_s3 }
  0x49   : > { %p2163_p10 = pnand %p2161_p6, %p2454_p13 }
  0x4b   : > { %p2164_p3 = pneg %p2163_p10 }
  0x4d   : > { %p2169_p7 = pnand %p2167_p5, %p2164_p3 }
  0x4f   : > { %2172 = shalt.err (!%p2169_p7)
}
  0x50   : > { %s2173_s22 = scalar_lea.vmem %s281_s25, 8192  ;;  %p2181_p2 = scmp.lt.s32.totalorder %s281_s25, %s281_s25 }
  0x51   : > { %p2174_p9 = scmp.ne.s32.totalorder %s281_s25, %s2173_s22  ;;  %p2182_p1 = scmp.lt.s32.totalorder %s2173_s22, %s2173_s22 }
  0x53   : > { %p2176_p12 = pnand %p2174_p9, %p2454_p13  ;;  %p2183_p4 = por %p2182_p1, %p2181_p2 }
  0x55   : > { %p2177_p0 = pneg %p2176_p12 }
  0x57   : > { %p2184_p8 = pnand %p2183_p4, %p2177_p0 }
  0x59   : > { %2187 = shalt.err (!%p2184_p8)
}
  0x5a   : > { %s2329_s21 = smov 128   ;;  %s2330_s23 = smov 8  }
  0x5b   : > { %1864 = dma.hbm_to_vmem [thread:$0]  (!%p2440_p11), %s2716_s3, 8192, %s281_s25, [#allocation6], %s2329_s21, %s2329_s21, %s2330_s23  }
  0x5c   : > { %s2331_s26 = smov [#allocation10]   ;;  %s2188_s18 = scalar_lea.hbm %s2720_s7, 1024 }
  0x5d   : > { %s312_s27 = sshll.u32 %s2331_s26, 4  ;;  %p2189_p4 = scmp.ne.s32.totalorder %s2720_s7, %s2188_s18  ;;  %s313_s27 = int_to_ptr.vmem [resolvable:$true] %s312_s27 }
  0x5e   : > { %p2195_p10 = scmp.lt.u32.totalorder %s2188_s18, %s2720_s7 }
  0x5f   : > { %p2191_p8 = pnand %p2189_p4, %p2454_p13 }
  0x61   : > { %p2192_p6 = pneg %p2191_p8 }
  0x63   : > { %p2197_p3 = pnand %p2195_p10, %p2192_p6 }
  0x65   : > { %2200 = shalt.err (!%p2197_p3)
}
  0x66   : > { %s2201_s25 = scalar_lea.vmem %s313_s27, 1024  ;;  %p2209_p12 = scmp.lt.s32.totalorder %s313_s27, %s313_s27 }
  0x67   : > { %p2202_p5 = scmp.ne.s32.totalorder %s313_s27, %s2201_s25  ;;  %p2210_p0 = scmp.lt.s32.totalorder %s2201_s25, %s2201_s25 }
  0x69   : > { %p2204_p7 = pnand %p2202_p5, %p2454_p13  ;;  %p2211_p2 = por %p2210_p0, %p2209_p12 }
  0x6b   : > { %p2205_p9 = pneg %p2204_p7 }
  0x6d   : > { %p2212_p1 = pnand %p2211_p2, %p2205_p9 }
  0x6f   : > { %2215 = shalt.err (!%p2212_p1)
}
  0x70   : > { %s2739_s1 = smov 4   ;;  %s2740_s24 = smov 64  }
  0x71   : > { %1870 = dma.hbm_to_vmem [thread:$0]  (!%p2440_p11), %s2720_s7, 1024, %s313_s27, [#allocation9], %s2740_s24, %s2740_s24, %s2739_s1  }
  0x72   : > { %s2544_s28 = sadd.s32 1, %s2320_s12   ;;  %s34_s20 = sadd.s32 1, %s2316_s11 }
  0x73   : > { %s31_s26 = ssub.s32 %s2320_s12, %s2544_s28  ;;  %p41_p13 = scmp.ne.s32.totalorder %s2316_s11, %s2312_s10 }
  0x74   : > { %p32_p4 = scmp.eq.s32.totalorder %s31_s26, 0  ;;  %p42_p8 = scmp.eq.s32.totalorder %s2320_s12, 0 }
  0x75   : > { %p2741_p6 = scmp.eq.s32.totalorder %s2410_s13, 1  ;;  %p1883_p3 = scmp.lt.s32.totalorder %s2320_s12, 2 }
  0x76   : > { %s2560_s14 = scalar_select %p32_p4, %s2316_s11, %s34_s20  }
  0x77   : > { %p2554_p10 = por %p2741_p6, %p41_p13  ;;  %p43_p5 = por %p42_p8, %p41_p13 }
  0x78   : > { %s329_s18 = sand.u32 1, %s2316_s11   ;;  %s1777_s27 = sshll.u32 %s2320_s12, 8 }
  0x79   : > { %s1640_s19 = sshll.u32 %s329_s18, 4  ;;  %s2567_s1 = scalar_lea.hbm %s2713_s0, %s1777_s27 }
  0x7a   : > { %s333_s24 = scalar_lea.vmem [#allocation2], %s1640_s19  ;;  %p2571_p11 = pnand %p1883_p3, %p43_p5 }
  0x7b   : > { %s340_s16 = sshll.u32 %s333_s24, 4  ;;  %s2575_s20 = scalar_lea.sflag [#allocation3], %s329_s18  ;;  %s2569_s16 = int_to_ptr.vmem [resolvable:$true] %s340_s16 }
  0x7c   : > { %s2216_s26 = scalar_lea.hbm %s2567_s1, 256  ;;  %p2218_p9 = pneg %p2571_p11 }
  0x7d   : > { %p2217_p7 = scmp.ne.s32.totalorder %s2567_s1, %s2216_s26  ;;  %s2221_s22 = scalar_lea.hbm %s2713_s0, 512 }
  0x7e   : > { %p2222_p2 = scmp.lt.u32.totalorder %s2567_s1, %s2713_s0  ;;  %p2223_p1 = scmp.lt.u32.totalorder %s2221_s22, %s2216_s26 }
  0x7f   : > { %p2219_p12 = pnand %p2218_p9, %p2217_p7  ;;  %p2225_p4 = scmp.lt.u32.totalorder %s2216_s26, %s2567_s1 }
  0x80   : > { %p2224_p13 = por %p2223_p1, %p2222_p2 }
  0x81   : > { %p2220_p0 = pneg %p2219_p12 }
  0x82   : > { %p2226_p8 = por %p2225_p4, %p2224_p13 }
  0x84   : > { %p2227_p6 = pnand %p2226_p8, %p2220_p0 }
  0x86   : > { %2230 = shalt.err (!%p2227_p6)
}
  0x87   : > { %s2231_s18 = scalar_lea.vmem %s2569_s16, 256  ;;  %s2332_s19 = smov [#allocation2]  }
  0x88   : > { %p2232_p3 = scmp.ne.s32.totalorder %s2569_s16, %s2231_s18  ;;  %s2236_s27 = sshll.u32 %s2332_s19, 4  ;;  %s2237_s27 = int_to_ptr.vmem [resolvable:$false] %s2236_s27 }
  0x89   : > { %s2238_s25 = scalar_lea.vmem %s2237_s27, 512  ;;  %p2239_p12 = scmp.lt.s32.totalorder %s2569_s16, %s2237_s27 }
  0x8a   : > { %p2234_p5 = pnand %p2232_p3, %p2218_p9  ;;  %p2240_p2 = scmp.lt.s32.totalorder %s2238_s25, %s2231_s18 }
  0x8c   : > { %p2235_p7 = pneg %p2234_p5  ;;  %p2241_p1 = por %p2240_p2, %p2239_p12 }
  0x8e   : > { %p2242_p13 = pnand %p2241_p1, %p2235_p7 }
  0x90   : > { %2245 = shalt.err (!%p2242_p13)
}
  0x91   : > { %1874 = dma.hbm_to_vmem [thread:$0]  (!%p2571_p11), %s2567_s1, 256, %s2569_s16, %s2575_s20, %s2329_s21, %s2329_s21, %s2330_s23  }
  0x92   : > { %p2744_p9 = scmp.ne.s32.totalorder %s2735_s17, 0 }
  0x93   : > { %s2609_s26 = sand.u32 (!%p2744_p9), 1, %s2312_s10   ;;  %p2745_p0 = scmp.ne.s32.totalorder (!%p2744_p9), %s2732_s15, 0 }
  0x94   : > { %352 = sbr.rel (%p2744_p9) target bundleno = 1158 (0x486), region = 56  ;;  %s1644_s22 = sshll.u32 (!%p2744_p9), %s2609_s26, 4 }
  0x95   : > { %s355_s24 = scalar_lea.sflag (!%p2744_p9), [#allocation3], %s2609_s26  ;;  %s2615_s30 = scalar_lea.vmem (!%p2744_p9), [#allocation2], %s1644_s22 }
  0x9b   : > { %2291 = dma.done.wait (%p2745_p0), %s355_s24, 256  }
  0x9c   : > { %2293 = vsyncadd (%p2745_p0), %s355_s24, 4294967040  ;;  %p2746_p11 = scmp.eq.s32.totalorder %s2410_s13, 0 }
  0x9e   : > { %2295 = dma.done.wait (%p2746_p11), [#allocation6], 12288   ;;  %p2747_p4 = pmov %p2746_p11 }
  0xa0   : > { %2297 = vsyncadd (%p2747_p4), [#allocation6], 4294955008  ;;  %p2748_p8 = pmov %p2747_p4 }
  0xa1   : > { %p2749_p6 = pmov %p2747_p4 }
  0xa2   : > { %2299 = dma.done.wait (%p2748_p8), [#allocation9], 3072  }
  0xa3   : > { %2301 = vsyncadd (%p2749_p6), [#allocation9], 4294964224  ;;  %v2333_v0 = vmov 0   ;;  %v1936_v1 = vld [vmem:[#allocation5 + $0x4] ss:$16 sps:$4 sm:$0xff]   ;;  %v413_v23 = vld [vmem:[%s2615_s30 + $0x8] sm:$0xff] }
  0xa4   : > { %661 = vmatprep.mubr.bf16.mxu1 %v2333_v0  ;;  %v1938_v2 = vld [vmem:[#allocation5] ss:$16 sps:$4 sm:$0xff]   ;;  %629 = vmatprep.subr.bf16.mxu1 %v1936_v1  ;;  %v1939_v3 = vld [vmem:[#allocation5 + $0x24] ss:$16 sps:$4 sm:$0xff]   ;;  %v1962_v24 = vld [vmem:[#allocation5 + $0xc] ss:$16 sps:$4 sm:$0xff]  }
  0xa5   : > { %630 = vmatpush1.bf16.msra.mxu1 %v1938_v2  ;;  %v1941_v4 = vld [vmem:[#allocation5 + $0x20] ss:$16 sps:$4 sm:$0xff]   ;;  %v1942_v5 = vld [vmem:[#allocation5 + $0x44] ss:$16 sps:$4 sm:$0xff]   ;;  %v1960_v28 = vld [vmem:[#allocation5 + $0x8] ss:$16 sps:$4 sm:$0xff]  }
  0xa6   : > { %631 = vmatprep.subr.bf16.mxu1 %v1939_v3  ;;  %v1944_v6 = vld [vmem:[#allocation5 + $0x40] ss:$16 sps:$4 sm:$0xff]   ;;  %v1945_v7 = vld [vmem:[#allocation5 + $0x64] ss:$16 sps:$4 sm:$0xff]   ;;  %v1965_v29 = vld [vmem:[#allocation5 + $0x2c] ss:$16 sps:$4 sm:$0xff]  }
  0xa7   : > { %v1947_v8 = vld [vmem:[#allocation5 + $0x60] ss:$16 sps:$4 sm:$0xff]   ;;  %v1948_v9 = vld [vmem:[#allocation5 + $0x84] ss:$16 sps:$4 sm:$0xff]   ;;  %v1963_v32 = vld [vmem:[#allocation5 + $0x28] ss:$16 sps:$4 sm:$0xff]  }
  0xa8   : > { %v1950_v10 = vld [vmem:[#allocation5 + $0x80] ss:$16 sps:$4 sm:$0xff]   ;;  %v1951_v11 = vld [vmem:[#allocation5 + $0xa4] ss:$16 sps:$4 sm:$0xff]   ;;  %v1968_v33 = vld [vmem:[#allocation5 + $0x4c] ss:$16 sps:$4 sm:$0xff]  }
  0xa9   : > { %632 = vmatpush1.bf16.msra.mxu1 %v1941_v4  ;;  %v1953_v12 = vld [vmem:[#allocation5 + $0xa0] ss:$16 sps:$4 sm:$0xff]   ;;  %v1954_v13 = vld [vmem:[#allocation5 + $0xc4] ss:$16 sps:$4 sm:$0xff]   ;;  %v1966_v36 = vld [vmem:[#allocation5 + $0x48] ss:$16 sps:$4 sm:$0xff]  }
  0xaa   : > { %633 = vmatprep.subr.bf16.mxu1 %v1942_v5  ;;  %v1956_v14 = vld [vmem:[#allocation5 + $0xc0] ss:$16 sps:$4 sm:$0xff]   ;;  %v1984_v15 = vld [vmem:[#allocation7 + $0x4] ss:$8 sps:$4 sm:$0xff]   ;;  %v1987_v18 = vld [vmem:[#allocation7 + $0x14] ss:$8 sps:$4 sm:$0xff]  }
  0xab   : > { %v1986_v16 = vld [vmem:[#allocation7] ss:$8 sps:$4 sm:$0xff]   ;;  %v1957_v17 = vld [vmem:[#allocation5 + $0xe4] ss:$16 sps:$4 sm:$0xff]   ;;  %1123 = vmatprep.subr.bf16.mxu0 %v1984_v15  ;;  %v1989_v21 = vld [vmem:[#allocation7 + $0x10] ss:$8 sps:$4 sm:$0xff]  }
  0xac   : > { %v1959_v19 = vld [vmem:[#allocation5 + $0xe0] ss:$16 sps:$4 sm:$0xff]   ;;  %1124 = vmatpush1.bf16.msra.mxu0 %v1986_v16  ;;  %v1990_v22 = vld [vmem:[#allocation7 + $0x24] ss:$8 sps:$4 sm:$0xff]   ;;  %v1993_v27 = vld [vmem:[#allocation7 + $0x34] ss:$8 sps:$4 sm:$0xff]   ;;  %v449_v16 = vlaneseq }
  0xad   : > { %634 = vmatpush1.bf16.msra.mxu1 %v1944_v6  ;;  %v412_v20 = vld [vmem:[%s2615_s30] sm:$0xff]  ;;  %1125 = vmatprep.subr.bf16.mxu0 %v1987_v18  ;;  %v1971_v37 = vld [vmem:[#allocation5 + $0x6c] ss:$16 sps:$4 sm:$0xff]   ;;  %v1969_v40 = vld [vmem:[#allocation5 + $0x68] ss:$16 sps:$4 sm:$0xff]   ;;  %vm2335_vm0 = vmmov 0  }
  0xae   : > { %635 = vmatprep.subr.bf16.mxu1 %v1945_v7  ;;  %v1992_v25 = vld [vmem:[#allocation7 + $0x20] ss:$8 sps:$4 sm:$0xff]   ;;  %v2631_v26 = vpack.c.bf16 %v413_v23, %v412_v20  ;;  %v1995_v30 = vld [vmem:[#allocation7 + $0x30] ss:$8 sps:$4 sm:$0xff]   ;;  %v1996_v31 = vld [vmem:[#allocation7 + $0x44] ss:$8 sps:$4 sm:$0xff]  }
  0xaf   : > { %v1998_v34 = vld [vmem:[#allocation7 + $0x40] ss:$8 sps:$4 sm:$0xff]   ;;  %v1999_v35 = vld [vmem:[#allocation7 + $0x54] ss:$8 sps:$4 sm:$0xff]   ;;  %v2001_v38 = vld [vmem:[#allocation7 + $0x50] ss:$8 sps:$4 sm:$0xff]  }
  0xb0   : > { %1126 = vmatpush1.bf16.msra.mxu0 %v1989_v21  ;;  %v2002_v39 = vld [vmem:[#allocation7 + $0x64] ss:$8 sps:$4 sm:$0xff]   ;;  %v2004_v42 = vld [vmem:[#allocation7 + $0x60] ss:$8 sps:$4 sm:$0xff]   ;;  %v2005_v43 = vld [vmem:[#allocation7 + $0x74] ss:$8 sps:$4 sm:$0xff]  }
  0xb1   : > { %636 = vmatpush1.bf16.msra.mxu1 %v1947_v8  ;;  %1127 = vmatprep.subr.bf16.mxu0 %v1990_v22  ;;  %v1974_v41 = vld [vmem:[#allocation5 + $0x8c] ss:$16 sps:$4 sm:$0xff]   ;;  %v1972_v44 = vld [vmem:[#allocation5 + $0x88] ss:$16 sps:$4 sm:$0xff]   ;;  %v2080_v5 = vld [vmem:[#allocation8 + $0x40] sm:$0xff]   ;;  %s408_s19 = scalar_lea.vmem [#allocation11], %s1644_s22 }
  0xb2   : > { %637 = vmatprep.subr.bf16.mxu1 %v1948_v9  ;;  %v1977_v45 = vld [vmem:[#allocation5 + $0xac] ss:$16 sps:$4 sm:$0xff]   ;;  %v2007_v46 = vld [vmem:[#allocation7 + $0x70] ss:$8 sps:$4 sm:$0xff]   ;;  %v2010_v50 = vld [vmem:[#allocation7 + $0x80] ss:$8 sps:$4 sm:$0xff]  }
  0xb3   : > { %v2008_v47 = vld [vmem:[#allocation7 + $0x84] ss:$8 sps:$4 sm:$0xff]   ;;  %v1975_v48 = vld [vmem:[#allocation5 + $0xa8] ss:$16 sps:$4 sm:$0xff]   ;;  %v2011_v51 = vld [vmem:[#allocation7 + $0x94] ss:$8 sps:$4 sm:$0xff]  }
  0xb4   : > { %1128 = vmatpush1.bf16.msra.mxu0 %v1992_v25  ;;  %v1980_v49 = vld [vmem:[#allocation5 + $0xcc] ss:$16 sps:$4 sm:$0xff]   ;;  %v1978_v52 = vld [vmem:[#allocation5 + $0xc8] ss:$16 sps:$4 sm:$0xff]   ;;  %v2081_v6 = vld [vmem:[#allocation8] sm:$0xff]   ;;  %s1522_s27 = sshll.u32 %s408_s19, 4  ;;  %s2664_s27 = int_to_ptr.vmem [resolvable:$true] %s1522_s27 }
  0xb5   : > { %638 = vmatpush1.bf16.msra.mxu1 %v1950_v10  ;;  %1129 = vmatprep.subr.bf16.mxu0 %v1993_v27  ;;  %v1983_v53 = vld [vmem:[#allocation5 + $0xec] ss:$16 sps:$4 sm:$0xff]   ;;  %v2013_v54 = vld [vmem:[#allocation7 + $0x90] ss:$8 sps:$4 sm:$0xff]   ;;  %v2016_v57 = vld [vmem:[#allocation7 + $0xa0] ss:$8 sps:$4 sm:$0xff]  }
  0xb6   : > { %639 = vmatprep.subr.bf16.mxu1 %v1951_v11  ;;  %v2014_v55 = vld [vmem:[#allocation7 + $0xa4] ss:$8 sps:$4 sm:$0xff]   ;;  %v1981_v56 = vld [vmem:[#allocation5 + $0xe8] ss:$16 sps:$4 sm:$0xff]   ;;  %v2017_v58 = vld [vmem:[#allocation7 + $0xb4] ss:$8 sps:$4 sm:$0xff]  }
  0xb7   : > { %v2019_v59 = vld [vmem:[#allocation7 + $0xb0] ss:$8 sps:$4 sm:$0xff]   ;;  %v2020_v60 = vld [vmem:[#allocation7 + $0xc4] ss:$8 sps:$4 sm:$0xff]   ;;  %v2022_v61 = vld [vmem:[#allocation7 + $0xc0] ss:$8 sps:$4 sm:$0xff]  }
  0xb8   : > { %1130 = vmatpush1.bf16.msra.mxu0 %v1995_v30  ;;  %v2023_v62 = vld [vmem:[#allocation7 + $0xd4] ss:$8 sps:$4 sm:$0xff]   ;;  %v2025_v63 = vld [vmem:[#allocation7 + $0xd0] ss:$8 sps:$4 sm:$0xff]   ;;  %v2028_v1 = vld [vmem:[#allocation7 + $0xe0] ss:$8 sps:$4 sm:$0xff]  }
  0xb9   : > { %640 = vmatpush1.bf16.msra.mxu1 %v1953_v12  ;;  %1131 = vmatprep.subr.bf16.mxu0 %v1996_v31  ;;  %v2029_v2 = vld [vmem:[#allocation7 + $0xf4] ss:$8 sps:$4 sm:$0xff]   ;;  %v2031_v3 = vld [vmem:[#allocation7 + $0xf0] ss:$8 sps:$4 sm:$0xff]   ;;  %v2034_v4 = vld [vmem:[#allocation7 + $0x104] ss:$8 sps:$4 sm:$0xff]  }
  0xba   : > { %641 = vmatprep.subr.bf16.mxu1 %v1954_v13  ;;  %v2082_v7 = vld [vmem:[#allocation8 + $0x48] sm:$0xff]   ;;  %v2084_v9 = vld [vmem:[#allocation8 + $0x50] sm:$0xff]   ;;  %v2086_v11 = vld [vmem:[#allocation8 + $0x58] sm:$0xff]   ;;  %s1778_s25 = sshll.u32 %s2410_s13, 8  ;;  %s1509_s22 = scalar_lea.sflag [#allocation4], %s2609_s26 }
  0xbb   : > { %v2083_v8 = vld [vmem:[#allocation8 + $0x8] sm:$0xff]   ;;  %v2085_v10 = vld [vmem:[#allocation8 + $0x10] sm:$0xff]   ;;  %v2087_v12 = vld [vmem:[#allocation8 + $0x18] sm:$0xff]   ;;  %s2669_s15 = scalar_lea.hbm %s2722_s9, %s1778_s25  ;;  %s2246_s13 = scalar_lea.vmem %s2664_s27, 256 }
  0xbc   : > { %1132 = vmatpush1.bf16.msra.mxu0 %v1998_v34  ;;  %v2088_v13 = vld [vmem:[#allocation8 + $0x60] sm:$0xff]   ;;  %v2090_v15 = vld [vmem:[#allocation8 + $0x68] sm:$0xff]   ;;  %p2247_p3 = scmp.ne.s32.totalorder %s2664_s27, %s2246_s13  ;;  %s2336_s17 = smov [#allocation11]  }
  0xbd   : > { %642 = vmatpush1.bf16.msra.mxu1 %v1956_v14  ;;  %1133 = vmatprep.subr.bf16.mxu0 %v1999_v35  ;;  %v2089_v14 = vld [vmem:[#allocation8 + $0x20] sm:$0xff]   ;;  %s2250_s21 = sshll.u32 %s2336_s17, 4  ;;  %s2251_s21 = int_to_ptr.vmem [resolvable:$false] %s2250_s21 }
  0xbe   : > { %643 = vmatprep.subr.bf16.mxu1 %v1957_v17  ;;  %v2635_v17 = vshrl.u32 %v449_v16, 7  ;;  %v2073_v16 = vld [vmem:[#allocation7 + $0x1d4] ss:$8 sps:$4 sm:$0xff]   ;;  %p2248_p5 = pnand %p2247_p3, %p2554_p10  ;;  %s2252_s23 = scalar_lea.vmem %s2251_s21, 512 }
  0xbf   : > { %p2253_p12 = scmp.lt.s32.totalorder %s2664_s27, %s2251_s21  ;;  %p2254_p2 = scmp.lt.s32.totalorder %s2252_s23, %s2246_s13 }
  0xc0   : > { %1134 = vmatpush1.bf16.msra.mxu0 %v2001_v38  ;;  %v451_v18 = vsub.s32 0, %v2635_v17  ;;  %v455_v20 = vsub.s32 1, %v2635_v17  ;;  %v2037_v38 = vld [vmem:[#allocation7 + $0x114] ss:$8 sps:$4 sm:$0xff]   ;;  %p2249_p7 = pneg %p2248_p5 }
  0xc1   : > { %644 = vmatpush1.bf16.msra.mxu1 %v1959_v19  ;;  %1135 = vmatprep.subr.bf16.mxu0 %v2002_v39  ;;  %v447_v19 = vld [vmem:[%s2715_s2] sm:$0xf]  ;;  %v2035_v39 = vld [vmem:[#allocation7 + $0x110] ss:$8 sps:$4 sm:$0xff]   ;;  %p2255_p1 = por %p2254_p2, %p2253_p12 }
  0xc2   : > { %672 = vmatprep.subr.bf16.mxu1 %v1962_v24  ;;  %v452_v21 = vrot.slane %v447_v19, %v451_v18  ;;  %v456_v22 = vrot.slane %v447_v19, %v455_v20 }
  0xc3   : > { %p2256_p13 = pnand %p2255_p1, %p2249_p7 }
  0xc4   : > { %662 = vmatmul.mubr.bf16.vlgmr.msra.gmra.mrb[0].mxu1 %v2631_v26  ;;  %1136 = vmatpush1.bf16.msra.mxu0 %v2004_v42  ;;  %v2043_v42 = vld [vmem:[#allocation7 + $0x134] ss:$8 sps:$4 sm:$0xff]  }
  0xc5   : > { %673 = vmatpush1.bf16.msra.mxu1 %v1960_v28  ;;  %704 = vmatprep.mubr.bf16.mxu1 %v2333_v0  ;;  %v2026_v0 = vld [vmem:[#allocation7 + $0xe4] ss:$8 sps:$4 sm:$0xff]  }
  0xc6   : > { %674 = vmatprep.subr.bf16.mxu1 %v1965_v29  ;;  %1137 = vmatprep.subr.bf16.mxu0 %v2005_v43  ;;  %v2041_v43 = vld [vmem:[#allocation7 + $0x130] ss:$8 sps:$4 sm:$0xff]  }
  0xc8   : > { %1138 = vmatpush1.bf16.msra.mxu0 %v2007_v46  ;;  %v2049_v46 = vld [vmem:[#allocation7 + $0x154] ss:$8 sps:$4 sm:$0xff]  }
  0xc9   : > { %675 = vmatpush1.bf16.msra.mxu1 %v1963_v32  ;;  %1139 = vmatprep.subr.bf16.mxu0 %v2008_v47  ;;  %v459_v47 = vsub.s32 2, %v2635_v17 }
  0xca   : > { %676 = vmatprep.subr.bf16.mxu1 %v1968_v33 }
  0xcc   : > { %1140 = vmatpush1.bf16.msra.mxu0 %v2010_v50  ;;  %v2052_v50 = vld [vmem:[#allocation7 + $0x164] ss:$8 sps:$4 sm:$0xff]  }
  0xcd   : > { %677 = vmatpush1.bf16.msra.mxu1 %v1966_v36  ;;  %1141 = vmatprep.subr.bf16.mxu0 %v2011_v51  ;;  %v460_v51 = vrot.slane %v447_v19, %v459_v47 }
  0xce   : > { %678 = vmatprep.subr.bf16.mxu1 %v1971_v37  ;;  %v2032_v37 = vld [vmem:[#allocation7 + $0x100] ss:$8 sps:$4 sm:$0xff]  }
  0xd0   : > { %1142 = vmatpush1.bf16.msra.mxu0 %v2013_v54 }
  0xd1   : > { %679 = vmatpush1.bf16.msra.mxu1 %v1969_v40  ;;  %1143 = vmatprep.subr.bf16.mxu0 %v2014_v55  ;;  %v2040_v40 = vld [vmem:[#allocation7 + $0x124] ss:$8 sps:$4 sm:$0xff]   ;;  %v2055_v55 = vld [vmem:[#allocation7 + $0x174] ss:$8 sps:$4 sm:$0xff]  }
  0xd2   : > { %680 = vmatprep.subr.bf16.mxu1 %v1974_v41  ;;  %v2038_v41 = vld [vmem:[#allocation7 + $0x120] ss:$8 sps:$4 sm:$0xff]  }
  0xd4   : > { %1144 = vmatpush1.bf16.msra.mxu0 %v2016_v57 }
  0xd5   : > { %681 = vmatpush1.bf16.msra.mxu1 %v1972_v44  ;;  %1145 = vmatprep.subr.bf16.mxu0 %v2017_v58  ;;  %v2046_v44 = vld [vmem:[#allocation7 + $0x144] ss:$8 sps:$4 sm:$0xff]  }
  0xd6   : > { %682 = vmatprep.subr.bf16.mxu1 %v1977_v45  ;;  %v2044_v45 = vld [vmem:[#allocation7 + $0x140] ss:$8 sps:$4 sm:$0xff]  }
  0xd8   : > { %1146 = vmatpush1.bf16.msra.mxu0 %v2019_v59 }
  0xd9   : > { %683 = vmatpush1.bf16.msra.mxu1 %v1975_v48  ;;  %1147 = vmatprep.subr.bf16.mxu0 %v2020_v60  ;;  %v463_v48 = vsub.s32 3, %v2635_v17  ;;  %v2097_v17 = vld [vmem:[#allocation10 + $0x8] sm:$0xff]  }
  0xda   : > { %684 = vmatprep.subr.bf16.mxu1 %v1980_v49  ;;  %v2047_v49 = vld [vmem:[#allocation7 + $0x150] ss:$8 sps:$4 sm:$0xff]  }
  0xdc   : > { %1148 = vmatpush1.bf16.msra.mxu0 %v2022_v61 }
  0xdd   : > { %685 = vmatpush1.bf16.msra.mxu1 %v1978_v52  ;;  %1149 = vmatprep.subr.bf16.mxu0 %v2023_v62  ;;  %v464_v52 = vrot.slane %v447_v19, %v463_v48  ;;  %v2071_v19 = vld [vmem:[#allocation7 + $0x1d0] ss:$8 sps:$4 sm:$0xff]   ;;  %v2096_v48 = vld [vmem:[#allocation10] sm:$0xff]  }
  0xde   : > { %686 = vmatprep.subr.bf16.mxu1 %v1983_v53  ;;  %v2050_v53 = vld [vmem:[#allocation7 + $0x160] ss:$8 sps:$4 sm:$0xff]  }
  0xe0   : > { %1150 = vmatpush1.bf16.msra.mxu0 %v2025_v63  ;;  %v2053_v63 = vld [vmem:[#allocation7 + $0x170] ss:$8 sps:$4 sm:$0xff]  }
  0xe1   : > { %687 = vmatpush1.bf16.msra.mxu1 %v1981_v56  ;;  %1151 = vmatprep.subr.bf16.mxu0 %v2026_v0 }
  0xe2   : > { %1779 = vmatprep.subr.bf16.mxu1 %v2080_v5 }
  0xe4   : > { %705 = vmatmul.mubr.bf16.vlgmr.msra.gmra.mrb[4].mxu1 %v2631_v26  ;;  %1152 = vmatpush1.bf16.msra.mxu0 %v2028_v1 }
  0xe5   : > { %1153 = vmatprep.subr.bf16.mxu0 %v2029_v2  ;;  %1780 = vmatpush3.bf16.msra.mxu1 %v2081_v6  ;;  %v2058_v2 = vld [vmem:[#allocation7 + $0x184] ss:$8 sps:$4 sm:$0xff]   ;;  %v2056_v6 = vld [vmem:[#allocation7 + $0x180] ss:$8 sps:$4 sm:$0xff]  }
  0xe6   : > { %1781 = vmatprep.subr.bf16.mxu1 %v2082_v7 }
  0xe8   : > { %1154 = vmatpush1.bf16.msra.mxu0 %v2031_v3 }
  0xe9   : > { %1166 = vmatprep.subr.bf16.mxu0 %v2034_v4  ;;  %1782 = vmatpush3.bf16.msra.mxu1 %v2083_v8  ;;  %v2061_v8 = vld [vmem:[#allocation7 + $0x194] ss:$8 sps:$4 sm:$0xff]  }
  0xea   : > { %1783 = vmatprep.subr.bf16.mxu1 %v2084_v9  ;;  %v2059_v9 = vld [vmem:[#allocation7 + $0x190] ss:$8 sps:$4 sm:$0xff]  }
  0xed   : > { %1784 = vmatpush3.bf16.msra.mxu1 %v2085_v10  ;;  %v2064_v10 = vld [vmem:[#allocation7 + $0x1a4] ss:$8 sps:$4 sm:$0xff]  }
  0xee   : > { %1785 = vmatprep.subr.bf16.mxu1 %v2086_v11  ;;  %v2062_v11 = vld [vmem:[#allocation7 + $0x1a0] ss:$8 sps:$4 sm:$0xff]  }
  0xf1   : > { %1786 = vmatpush3.bf16.msra.mxu1 %v2087_v12  ;;  %v2067_v12 = vld [vmem:[#allocation7 + $0x1b4] ss:$8 sps:$4 sm:$0xff]  }
  0xf2   : > { %1787 = vmatprep.subr.bf16.mxu1 %v2088_v13  ;;  %v2065_v13 = vld [vmem:[#allocation7 + $0x1b0] ss:$8 sps:$4 sm:$0xff]  }
  0xf5   : > { %1788 = vmatpush3.bf16.msra.mxu1 %v2089_v14  ;;  %v2070_v14 = vld [vmem:[#allocation7 + $0x1c4] ss:$8 sps:$4 sm:$0xff]  }
  0xf6   : > { %1789 = vmatprep.subr.bf16.mxu1 %v2090_v15  ;;  %v2068_v15 = vld [vmem:[#allocation7 + $0x1c0] ss:$8 sps:$4 sm:$0xff]  }
 0x197   : > { %v663_v23 = vpop.f32.mrb[0].mxu1 }
 0x198   : > { %v664_v24 = vadd.f32 %v663_v23, %v452_v21  ;;  %v665_v25 = vpop.f32.mrb[1].mxu1  ;;  %v2079_v23 = vld [vmem:[#allocation7 + $0x1f4] ss:$8 sps:$4 sm:$0xff]  }
 0x199   : > { %v666_v26 = vadd.f32 %v665_v25, %v456_v22  ;;  %v667_v27 = vpop.f32.mrb[2].mxu1  ;;  %v2091_v25 = vld [vmem:[#allocation8 + $0x28] sm:$0xff]  }
 0x19a   : > { %v668_v28 = vadd.f32 %v667_v27, %v452_v21  ;;  %v669_v29 = vpop.f32.mrb[3].mxu1  ;;  %v715_v31 = vmax.f32 %v664_v24, 0.0  ;;  %v2076_v21 = vld [vmem:[#allocation7 + $0x1e4] ss:$8 sps:$4 sm:$0xff]   ;;  %v2077_v24 = vld [vmem:[#allocation7 + $0x1f0] ss:$8 sps:$4 sm:$0xff]   ;;  %1790 = vmatpush3.bf16.msra.mxu1 %v2091_v25 }
 0x19b   : > { %v670_v30 = vadd.f32 %v669_v29, %v456_v22  ;;  %v716_v33 = vmax.f32 %v666_v26, 0.0  ;;  %v2074_v22 = vld [vmem:[#allocation7 + $0x1e0] ss:$8 sps:$4 sm:$0xff]   ;;  %v2092_v26 = vld [vmem:[#allocation8 + $0x70] sm:$0xff]   ;;  %v2095_v29 = vld [vmem:[#allocation8 + $0x38] sm:$0xff]  }
 0x19c   : > { %v719_v32 = vmax.f32 %v668_v28, 0.0  ;;  %v2093_v27 = vld [vmem:[#allocation8 + $0x30] sm:$0xff]   ;;  %1791 = vmatprep.subr.bf16.mxu1 %v2092_v26  ;;  %v2094_v28 = vld [vmem:[#allocation8 + $0x78] sm:$0xff]  }
 0x19d   : > { %v720_v34 = vmax.f32 %v670_v30, 0.0  ;;  %v2334_v30 = vmov 0.0  }
 0x19e   : > { %v723_v35 = vpack.c.bf16 %v719_v32, %v715_v31  ;;  %1792 = vmatpush3.bf16.msra.mxu1 %v2093_v27  ;;  %v791_v31 = vld [vmem:[%s2717_s4] sm:$0x3] }
 0x19f   : > { %v724_v36 = vpack.c.bf16 %v720_v34, %v716_v33  ;;  %1793 = vmatprep.subr.bf16.mxu1 %v2094_v28  ;;  %v796_v32 = vrot.slane %v791_v31, %v451_v18  ;;  %v800_v33 = vrot.slane %v791_v31, %v455_v20  ;;  %v2098_v18 = vld [vmem:[#allocation10 + $0x10] sm:$0xff]   ;;  %v2099_v20 = vld [vmem:[#allocation10 + $0x18] sm:$0xff]  }
 0x1a1   : > { %1155 = vmatprep.mubr.bf16.mxu0 %v724_v36 }
 0x1a2   : > { %1156 = vmatmul.mubr.bf16.vlgmr.msra.gmra.mrb[0].mxu0 %v723_v35  ;;  %1794 = vmatpush3.bf16.msra.mxu1 %v2095_v29 }
 0x1a3   : > { %1167 = vmatpush1.bf16.msra.mxu0 %v2032_v37  ;;  %1810 = vmatprep.subr.bf16.mxu1 %v2334_v30 }
 0x1a4   : > { %1168 = vmatprep.subr.bf16.mxu0 %v2037_v38 }
 0x1a7   : > { %1169 = vmatpush1.bf16.msra.mxu0 %v2035_v39 }
 0x1a8   : > { %1170 = vmatprep.subr.bf16.mxu0 %v2040_v40 }
 0x1ab   : > { %1171 = vmatpush1.bf16.msra.mxu0 %v2038_v41 }
 0x1ac   : > { %1172 = vmatprep.subr.bf16.mxu0 %v2043_v42 }
 0x1af   : > { %1173 = vmatpush1.bf16.msra.mxu0 %v2041_v43 }
 0x1b0   : > { %1174 = vmatprep.subr.bf16.mxu0 %v2046_v44 }
 0x1b3   : > { %1175 = vmatpush1.bf16.msra.mxu0 %v2044_v45 }
 0x1b4   : > { %1176 = vmatprep.subr.bf16.mxu0 %v2049_v46 }
 0x1b7   : > { %1177 = vmatpush1.bf16.msra.mxu0 %v2047_v49  ;;  %v706_v54 = vpop.f32.mrb[4].mxu1  ;;  %v2100_v49 = vld [vmem:[#allocation10 + $0x20] sm:$0xff]  }
 0x1b8   : > { %1178 = vmatprep.subr.bf16.mxu0 %v2052_v50  ;;  %v707_v56 = vadd.f32 %v706_v54, %v460_v51  ;;  %v708_v57 = vpop.f32.mrb[5].mxu1  ;;  %v2101_v50 = vld [vmem:[#allocation10 + $0x28] sm:$0xff]   ;;  %v1746_v54 = vld [vmem:[%s2719_s6] ss:$0 sm:$0xff] }
 0x1b9   : > { %v709_v58 = vadd.f32 %v708_v57, %v464_v52  ;;  %v710_v59 = vpop.f32.mrb[6].mxu1 }
 0x1ba   : > { %v717_v60 = vmax.f32 %v707_v56, 0.0  ;;  %v711_v61 = vadd.f32 %v710_v59, %v460_v51  ;;  %v712_v62 = vpop.f32.mrb[7].mxu1  ;;  %v2102_v51 = vld [vmem:[#allocation10 + $0x30] sm:$0xff]  }
 0x1bb   : > { %1179 = vmatpush1.bf16.msra.mxu0 %v2050_v53  ;;  %v718_v0 = vmax.f32 %v709_v58, 0.0  ;;  %v713_v1 = vadd.f32 %v712_v62, %v464_v52  ;;  %v2103_v52 = vld [vmem:[#allocation10 + $0x38] sm:$0xff]  }
 0x1bc   : > { %1180 = vmatprep.subr.bf16.mxu0 %v2055_v55  ;;  %v721_v3 = vmax.f32 %v711_v61, 0.0 }
 0x1bd   : > { %v722_v4 = vmax.f32 %v713_v1, 0.0  ;;  %v1763_v1 = vld [vmem:[%s2721_s8] ss:$0 sm:$0xff] }
 0x1be   : > { %v725_v5 = vpack.c.bf16 %v721_v3, %v717_v60 }
 0x1bf   : > { %1181 = vmatpush1.bf16.msra.mxu0 %v2053_v63  ;;  %v726_v7 = vpack.c.bf16 %v722_v4, %v718_v0 }
 0x1c0   : > { %1182 = vmatprep.subr.bf16.mxu0 %v2058_v2 }
 0x1c1   : > { %1198 = vmatprep.mubr.bf16.mxu0 %v726_v7 }
 0x1c3   : > { %1183 = vmatpush1.bf16.msra.mxu0 %v2056_v6 }
 0x1c4   : > { %1184 = vmatprep.subr.bf16.mxu0 %v2061_v8 }
 0x1c7   : > { %1185 = vmatpush1.bf16.msra.mxu0 %v2059_v9 }
 0x1c8   : > { %1186 = vmatprep.subr.bf16.mxu0 %v2064_v10 }
 0x1cb   : > { %1187 = vmatpush1.bf16.msra.mxu0 %v2062_v11 }
 0x1cc   : > { %1188 = vmatprep.subr.bf16.mxu0 %v2067_v12 }
 0x1cf   : > { %1189 = vmatpush1.bf16.msra.mxu0 %v2065_v13 }
 0x1d0   : > { %1190 = vmatprep.subr.bf16.mxu0 %v2070_v14 }
 0x1d3   : > { %1191 = vmatpush1.bf16.msra.mxu0 %v2068_v15 }
 0x1d4   : > { %1192 = vmatprep.subr.bf16.mxu0 %v2073_v16 }
 0x1d7   : > { %1193 = vmatpush1.bf16.msra.mxu0 %v2071_v19 }
 0x1d8   : > { %1194 = vmatprep.subr.bf16.mxu0 %v2076_v21 }
 0x1db   : > { %1195 = vmatpush1.bf16.msra.mxu0 %v2074_v22 }
 0x1dc   : > { %1196 = vmatprep.subr.bf16.mxu0 %v2079_v23 }
 0x1df   : > { %1197 = vmatpush1.bf16.msra.mxu0 %v2077_v24 }
 0x1e2   : > { %1199 = vmatmul.mubr.bf16.vlgmr.msra.gmra.mrb[0].mxu0 %v725_v5 }
 0x2b5   : > { %v1200_v34 = vpop.f32.mrb[0].mxu0 }
 0x2b6   : > { %v1830_v35 = vadd.f32 %v1200_v34, %v796_v32  ;;  %v1202_v36 = vpop.f32.mrb[1].mxu0 }
 0x2b7   : > { %v1831_v37 = vadd.f32 %v1202_v36, %v800_v33  ;;  %v1204_v38 = vpop.f32.mrb[2].mxu0 }
 0x2b8   : > { %v1832_v39 = vadd.f32 %v1204_v38, %v796_v32  ;;  %v1206_v40 = vpop.f32.mrb[3].mxu0  ;;  %v1209_v42 = vmax.f32 %v1830_v35, 0.0 }
 0x2b9   : > { %v1833_v41 = vadd.f32 %v1206_v40, %v800_v33  ;;  %v1210_v44 = vmax.f32 %v1831_v37, 0.0 }
 0x2ba   : > { %v1211_v43 = vmax.f32 %v1832_v39, 0.0 }
 0x2bb   : > { %v1212_v45 = vmax.f32 %v1833_v41, 0.0 }
 0x2bc   : > { %v1213_v46 = vpack.c.bf16 %v1211_v43, %v1209_v42 }
 0x2bd   : > { %v1214_v47 = vpack.c.bf16 %v1212_v45, %v1210_v44 }
 0x2bf   : > { %1382 = vmatprep.mubr.bf16.mxu1 %v1214_v47 }
 0x2c0   : > { %1383 = vmatmul.mubr.bf16.vlgmr.msra.gmra.mrb[8].mxu1 %v1213_v46 }
 0x2c1   : > { %1811 = vmatpush3.bf16.msra.mxu1 %v2096_v48  ;;  %1826 = vmatprep.mubr.msk.bf16.mxu1 %vm2335_vm0, %v2334_v30 }
 0x2c2   : > { %1812 = vmatprep.subr.bf16.mxu1 %v2334_v30 }
 0x2c5   : > { %1813 = vmatpush3.bf16.msra.mxu1 %v2097_v17 }
 0x2c6   : > { %1814 = vmatprep.subr.bf16.mxu1 %v2334_v30 }
 0x2c9   : > { %1815 = vmatpush3.bf16.msra.mxu1 %v2098_v18 }
 0x2ca   : > { %1816 = vmatprep.subr.bf16.mxu1 %v2334_v30 }
 0x2cd   : > { %1817 = vmatpush3.bf16.msra.mxu1 %v2099_v20 }
 0x2ce   : > { %1818 = vmatprep.subr.bf16.mxu1 %v2334_v30 }
 0x2d1   : > { %1819 = vmatpush3.bf16.msra.mxu1 %v2100_v49 }
 0x2d2   : > { %1820 = vmatprep.subr.bf16.mxu1 %v2334_v30 }
 0x2d5   : > { %1821 = vmatpush3.bf16.msra.mxu1 %v2101_v50 }
 0x2d6   : > { %1822 = vmatprep.subr.bf16.mxu1 %v2334_v30 }
 0x2d9   : > { %1823 = vmatpush3.bf16.msra.mxu1 %v2102_v51 }
 0x2da   : > { %1824 = vmatprep.subr.bf16.mxu1 %v2334_v30 }
 0x2dd   : > { %1825 = vmatpush3.bf16.msra.mxu1 %v2103_v52 }
 0x393   : > { %v1795_v53 = vpop.f32.mrb[8].mxu1 }
 0x394   : > { %v1796_v55 = vpop.f32.mrb[9].mxu1 }
 0x395   : > { %v1797_v56 = vadd.f32 %v1796_v55, %v1795_v53  ;;  %v1798_v57 = vpop.f32.mrb[10].mxu1 }
 0x396   : > { %v1799_v58 = vpop.f32.mrb[11].mxu1 }
 0x397   : > { %v1385_v59 = vadd.f32 %v1797_v56, %v1746_v54  ;;  %v1800_v60 = vadd.f32 %v1799_v58, %v1798_v57 }
 0x399   : > { %v1388_v61 = vadd.f32 %v1800_v60, %v1746_v54  ;;  %v1391_v62 = vmax.f32 %v1385_v59, 0.0 }
 0x39b   : > { %v1392_v63 = vmax.f32 %v1388_v61, 0.0 }
 0x39d   : > { %v1393_v0 = vpack.c.bf16 %v1392_v63, %v1391_v62 }
 0x39f   : > { %1827 = vmatmul.mubr.bf16.vlgmr.msra.gmra.mrb[12].mxu1 %v1393_v0 }
 0x472   : > { %v1499_v2 = vpop.f32.mrb[12].mxu1 }
 0x473   : > { %v1500_v3 = vadd.f32 %v1763_v1, %v1499_v2  ;;  %v1828_v4 = vpop.f32.mrb[13].mxu1 }
 0x474   : > { %v1502_v5 = vpop.f32.mrb[14].mxu1 }
 0x475   : > { %1506 = vst [vmem:[%s408_s19] sm:$0xff] %v1500_v3  ;;  %v1503_v6 = vadd.f32 %v1763_v1, %v1502_v5  ;;  %v1829_v7 = vpop.f32.mrb[15].mxu1 }
 0x477   : > { %1507 = vst [vmem:[%s408_s19 + $0x8] sm:$0xff] %v1503_v6 }
 0x478   : > { %2259 = shalt.err (!%p2256_p13)
}
 0x479   : > { %s2260_s1 = scalar_lea.hbm %s2669_s15, 256  ;;  %s2264_s18 = scalar_lea.hbm %s2722_s9, 512 }
 0x47a   : > { %p2261_p9 = scmp.ne.s32.totalorder %s2669_s15, %s2260_s1  ;;  %p2265_p4 = scmp.lt.u32.totalorder %s2669_s15, %s2722_s9 }
 0x47b   : > { %p2266_p8 = scmp.lt.u32.totalorder %s2264_s18, %s2260_s1  ;;  %p2268_p3 = scmp.lt.u32.totalorder %s2260_s1, %s2669_s15 }
 0x47c   : > { %p2262_p0 = pnand %p2261_p9, %p2554_p10 }
 0x47d   : > { %p2267_p6 = por %p2266_p8, %p2265_p4 }
 0x47e   : > { %p2263_p11 = pneg %p2262_p0 }
 0x47f   : > { %p2269_p5 = por %p2268_p3, %p2267_p6 }
 0x481   : > { %p2270_p7 = pnand %p2269_p5, %p2263_p11 }
 0x483   : > { %2273 = shalt.err (!%p2270_p7)
}
 0x484   : > { %s2337_s24 = smov 128   ;;  %s2338_s30 = smov 8  }
 0x485   : > { %1856 = dma.vmem_to_hbm [thread:$0]  (%p2554_p10), %s2664_s27, 256, %s2669_s15, %s1509_s22, %s2337_s24, %s2337_s24, %s2338_s30  }
 0x486 PF: > { %s2750_s13 = sld [smem:[#allocation16_spill]]  ;;  %s2751_s17 = sld [smem:[#allocation17_spill]] }
 0x487   : > { %p2753_p2 = scmp.ge.s32.totalorder %s2320_s12, 2 }
 0x48c   : > { %s1537_s21 = sand.u32 1, %s2750_s13   ;;  %p2752_p12 = scmp.ne.s32.totalorder %s2751_s17, 0 }
 0x48d   : > { %s1538_s23 = scalar_lea.sflag [#allocation4], %s1537_s21 }
 0x48e   : > { %p1876_p1 = pnand %p2753_p2, %p2752_p12 }
 0x490   : > { %2303 = dma.done.wait (!%p1876_p1), %s1538_s23, 256  }
 0x491   : > { %2305 = vsyncadd (!%p1876_p1), %s1538_s23, 4294967040  ;;  %p24_p13 = scmp.ge.s32.totalorder %s2544_s28, 4   ;;  %s2754_s30 = smov %s2312_s10 }
 0x492   : > { %s2755_s10 = smov %s2316_s11  ;;  %s2756_s11 = smov %s2560_s14 }
 0x493   : > { %s2757_s12 = smov %s2544_s28  ;;  %26 = sbr.rel (!%p24_p13) target bundleno = 9 (0x9), region = 117 }
 0x49a   :  { %1543 = vsyncpa [#allocation3], 1 }
 0x49b   :  { %1545 = vsyncpa [#allocation3 + $0x1], 1 }
 0x49c   :  { %1546 = vsyncpa [#allocation6], 1 }
 0x49d   :  { %1547 = vsyncpa [#allocation9], 1 }
 0x49e   :  { %1548 = vsyncpa [#allocation4], 1 }
 0x49f   :  { %1550 = vsyncpa [#allocation4 + $0x1], 1 }

// kernel: tpu_custom_call.1
= control target key start
LH: loop header
LB: loop body
LE: loop exit
PB: predicated region body
PF: predicated region fallthrough
CT: control target
= control target key end

     0   :  { %s2713_s0 = inlined_call_operand.hbm [shape: f32[32,128], index: 0, kind: input, shape index: {}]   ;;  %s2714_s1 = inlined_call_operand.hbm [shape: bf16[128,512], index: 1, kind: input, shape index: {}]   ;;  %s2715_s2 = inlined_call_operand.vmem [shape: f32[1,512], index: 2, kind: input, shape index: {}]   ;;  %s2716_s3 = inlined_call_operand.hbm [shape: bf16[512,256], index: 3, kind: input, shape index: {}]   ;;  %s2717_s4 = inlined_call_operand.vmem [shape: f32[1,256], index: 4, kind: input, shape index: {}]   ;;  %s2718_s5 = inlined_call_operand.hbm [shape: bf16[256,128], index: 5, kind: input, shape index: {}]   ;;  %s2719_s6 = inlined_call_operand.vmem [shape: f32[1,128], index: 6, kind: input, shape index: {}]   ;;  %s2720_s7 = inlined_call_operand.hbm [shape: bf16[128,128], index: 7, kind: input, shape index: {}]   ;;  %s2721_s8 = inlined_call_operand.vmem [shape: f32[1,128], index: 8, kind: input, shape index: {}]   ;;  %s2722_s9 = inlined_call_operand.hbm [shape: f32[32,128], index: 9, kind: output, shape index: {}]  }
   0x1   :  { %2730 = sst [smem:[#allocation18_spill]] %s2714_s1 }
   0x2   :  { %14 = vsyncpa [#allocation3], 0 }
   0x3   :  { %16 = vsyncpa [#allocation3 + $0x1], 0 }
   0x4   :  { %17 = vsyncpa [#allocation6], 0 }
   0x5   :  { %18 = vsyncpa [#allocation9], 0 }
   0x6   :  { %19 = vsyncpa [#allocation4], 0 }
   0x7   :  { %21 = vsyncpa [#allocation4 + $0x1], 0  ;;  %s2389_s30 = smov 0   ;;  %s2391_s10 = smov 0  }
   0x8   :  { %s2393_s11 = smov 0   ;;  %s2395_s12 = smov 0  }
   0x9 LB: > { %2731 = sst [smem:[#allocation16_spill]] %s2308_s30  ;;  %s2410_s13 = sadd.s32 4294967295, %s2320_s12   ;;  %s2320_s12 = sphi %s2395_s12, %s2757_s12   ;;  %s2316_s11 = sphi %s2393_s11, %s2756_s11   ;;  %s2312_s10 = sphi %s2391_s10, %s2755_s10   ;;  %s2308_s30 = sphi %s2389_s30, %s2754_s30  }
   0xa   : > { %s1633_s14 = sadd.s32 4294967294, %s2320_s12   ;;  %p47_p0 = scmp.ne.s32.totalorder %s2312_s10, %s2308_s30 }
   0xb   : > { %p2723_p1 = scmp.eq.s32.totalorder %s2410_s13, 0  ;;  %p245_p3 = scmp.eq.s32.totalorder %s1633_s14, 1 }
   0xc   : > { %p1634_p5 = scmp.ge.s32.totalorder %s2320_s12, 1  ;;  %p252_p7 = scmp.lt.s32.totalorder %s2320_s12, 3 }
   0xd   : > { %p2419_p4 = por %p2723_p1, %p47_p0  ;;  %p2424_p6 = por %p245_p3, %p47_p0 }
   0xe   : > { %p2429_p8 = pnand %p1634_p5, %p252_p7  ;;  %s2322_s18 = smov [#allocation5]  }
   0xf   : > { %s2732_s15 = scalar_select %p2419_p4, 1, 0 }
  0x10   : > { %s2733_s16 = scalar_select %p2424_p6, 1, 0 }
  0x11   : > { %s2735_s17 = scalar_select %p2429_p8, 1, 0 }
  0x12   : > { %2734 = sst [smem:[#allocation17_spill]] %s2733_s16  ;;  %s264_s19 = sshll.u32 %s2322_s18, 4  ;;  %s2433_s19 = int_to_ptr.vmem [resolvable:$true] %s264_s19 }
  0x13   : > { %p1858_p9 = pneg %p2429_p8  ;;  %s2323_s21 = smov [#allocation8]  }
  0x14   : > { %s296_s22 = sshll.u32 %s2323_s21, 4  ;;  %s2737_s1 = sld [smem:[#allocation18_spill]]  ;;  %s2444_s22 = int_to_ptr.vmem [resolvable:$true] %s296_s22 }
  0x15   : > { %p2440_p11 = pnand %p1858_p9, %p2723_p1 }
  0x17   : > { %p2454_p13 = pneg %p2440_p11 }
  0x1a   : > { %s2104_s25 = scalar_lea.hbm %s2737_s1, 4096 }
  0x1b   : > { %p2105_p12 = scmp.ne.s32.totalorder %s2737_s1, %s2104_s25  ;;  %p2111_p5 = scmp.lt.u32.totalorder %s2104_s25, %s2737_s1 }
  0x1d   : > { %p2107_p0 = pnand %p2454_p13, %p2105_p12 }
  0x1f   : > { %p2108_p3 = pneg %p2107_p0 }
  0x21   : > { %p2113_p7 = pnand %p2111_p5, %p2108_p3 }
  0x23   : > { %2116 = shalt.err (!%p2113_p7)
}
  0x24   : > { %s2117_s18 = scalar_lea.vmem %s2433_s19, 4096  ;;  %p2125_p2 = scmp.lt.s32.totalorder %s2433_s19, %s2433_s19 }
  0x25   : > { %p2118_p9 = scmp.ne.s32.totalorder %s2433_s19, %s2117_s18  ;;  %p2126_p6 = scmp.lt.s32.totalorder %s2117_s18, %s2117_s18 }
  0x27   : > { %p2120_p10 = pnand %p2118_p9, %p2454_p13  ;;  %p2127_p12 = por %p2126_p6, %p2125_p2 }
  0x29   : > { %p2121_p1 = pneg %p2120_p10 }
  0x2b   : > { %p2128_p0 = pnand %p2127_p12, %p2121_p1 }
  0x2d   : > { %2131 = shalt.err (!%p2128_p0)
}
  0x2e   : > { %s2324_s21 = smov 256   ;;  %s2325_s23 = smov 16  }
  0x2f   : > { %1861 = dma.hbm_to_vmem [thread:$0]  (!%p2440_p11), %s2737_s1, 4096, %s2433_s19, [#allocation6], %s2324_s21, %s2324_s21, %s2325_s23  }
  0x30   : > { %s2132_s29 = scalar_lea.hbm %s2718_s5, 2048 }
  0x31   : > { %p2133_p2 = scmp.ne.s32.totalorder %s2718_s5, %s2132_s29  ;;  %p2139_p10 = scmp.lt.u32.totalorder %s2132_s29, %s2718_s5 }
  0x33   : > { %p2135_p1 = pnand %p2133_p2, %p2454_p13 }
  0x35   : > { %p2136_p6 = pneg %p2135_p1 }
  0x37   : > { %p2141_p3 = pnand %p2139_p10, %p2136_p6 }
  0x39   : > { %2144 = shalt.err (!%p2141_p3)
}
  0x3a   : > { %s2145_s19 = scalar_lea.vmem %s2444_s22, 2048  ;;  %p2153_p12 = scmp.lt.s32.totalorder %s2444_s22, %s2444_s22 }
  0x3b   : > { %p2146_p5 = scmp.ne.s32.totalorder %s2444_s22, %s2145_s19  ;;  %p2154_p0 = scmp.lt.s32.totalorder %s2145_s19, %s2145_s19 }
  0x3d   : > { %p2148_p7 = pnand %p2146_p5, %p2454_p13  ;;  %p2155_p2 = por %p2154_p0, %p2153_p12 }
  0x3f   : > { %p2149_p9 = pneg %p2148_p7 }
  0x41   : > { %p2156_p1 = pnand %p2155_p2, %p2149_p9 }
  0x43   : > { %2159 = shalt.err (!%p2156_p1)
}
  0x44   : > { %s2728_s16 = smov 64   ;;  %s2729_s30 = smov 4  }
  0x45   : > { %1867 = dma.hbm_to_vmem [thread:$0]  (!%p2440_p11), %s2718_s5, 2048, %s2444_s22, [#allocation9], %s2728_s16, %s2728_s16, %s2729_s30  }
  0x46   : > { %s2328_s24 = smov [#allocation7]   ;;  %s2160_s29 = scalar_lea.hbm %s2716_s3, 8192 }
  0x47   : > { %s280_s25 = sshll.u32 %s2328_s24, 4  ;;  %p2161_p6 = scmp.ne.s32.totalorder %s2716_s3, %s2160_s29  ;;  %s281_s25 = int_to_ptr.vmem [resolvable:$true] %s280_s25 }
  0x48   : > { %p2167_p5 = scmp.lt.u32.totalorder %s2160_s29, %s2716_s3 }
  0x49   : > { %p2163_p10 = pnand %p2161_p6, %p2454_p13 }
  0x4b   : > { %p2164_p3 = pneg %p2163_p10 }
  0x4d   : > { %p2169_p7 = pnand %p2167_p5, %p2164_p3 }
  0x4f   : > { %2172 = shalt.err (!%p2169_p7)
}
  0x50   : > { %s2173_s22 = scalar_lea.vmem %s281_s25, 8192  ;;  %p2181_p2 = scmp.lt.s32.totalorder %s281_s25, %s281_s25 }
  0x51   : > { %p2174_p9 = scmp.ne.s32.totalorder %s281_s25, %s2173_s22  ;;  %p2182_p1 = scmp.lt.s32.totalorder %s2173_s22, %s2173_s22 }
  0x53   : > { %p2176_p12 = pnand %p2174_p9, %p2454_p13  ;;  %p2183_p4 = por %p2182_p1, %p2181_p2 }
  0x55   : > { %p2177_p0 = pneg %p2176_p12 }
  0x57   : > { %p2184_p8 = pnand %p2183_p4, %p2177_p0 }
  0x59   : > { %2187 = shalt.err (!%p2184_p8)
}
  0x5a   : > { %s2329_s21 = smov 128   ;;  %s2330_s23 = smov 8  }
  0x5b   : > { %1864 = dma.hbm_to_vmem [thread:$0]  (!%p2440_p11), %s2716_s3, 8192, %s281_s25, [#allocation6], %s2329_s21, %s2329_s21, %s2330_s23  }
  0x5c   : > { %s2331_s26 = smov [#allocation10]   ;;  %s2188_s18 = scalar_lea.hbm %s2720_s7, 1024 }
  0x5d   : > { %s312_s27 = sshll.u32 %s2331_s26, 4  ;;  %p2189_p4 = scmp.ne.s32.totalorder %s2720_s7, %s2188_s18  ;;  %s313_s27 = int_to_ptr.vmem [resolvable:$true] %s312_s27 }
  0x5e   : > { %p2195_p10 = scmp.lt.u32.totalorder %s2188_s18, %s2720_s7 }
  0x5f   : > { %p2191_p8 = pnand %p2189_p4, %p2454_p13 }
  0x61   : > { %p2192_p6 = pneg %p2191_p8 }
  0x63   : > { %p2197_p3 = pnand %p2195_p10, %p2192_p6 }
  0x65   : > { %2200 = shalt.err (!%p2197_p3)
}
  0x66   : > { %s2201_s25 = scalar_lea.vmem %s313_s27, 1024  ;;  %p2209_p12 = scmp.lt.s32.totalorder %s313_s27, %s313_s27 }
  0x67   : > { %p2202_p5 = scmp.ne.s32.totalorder %s313_s27, %s2201_s25  ;;  %p2210_p0 = scmp.lt.s32.totalorder %s2201_s25, %s2201_s25 }
  0x69   : > { %p2204_p7 = pnand %p2202_p5, %p2454_p13  ;;  %p2211_p2 = por %p2210_p0, %p2209_p12 }
  0x6b   : > { %p2205_p9 = pneg %p2204_p7 }
  0x6d   : > { %p2212_p1 = pnand %p2211_p2, %p2205_p9 }
  0x6f   : > { %2215 = shalt.err (!%p2212_p1)
}
  0x70   : > { %s2739_s1 = smov 4   ;;  %s2740_s24 = smov 64  }
  0x71   : > { %1870 = dma.hbm_to_vmem [thread:$0]  (!%p2440_p11), %s2720_s7, 1024, %s313_s27, [#allocation9], %s2740_s24, %s2740_s24, %s2739_s1  }
  0x72   : > { %s2544_s28 = sadd.s32 1, %s2320_s12   ;;  %s34_s20 = sadd.s32 1, %s2316_s11 }
  0x73   : > { %s31_s26 = ssub.s32 %s2320_s12, %s2544_s28  ;;  %p41_p13 = scmp.ne.s32.totalorder %s2316_s11, %s2312_s10 }
  0x74   : > { %p32_p4 = scmp.eq.s32.totalorder %s31_s26, 0  ;;  %p42_p8 = scmp.eq.s32.totalorder %s2320_s12, 0 }
  0x75   : > { %p2741_p6 = scmp.eq.s32.totalorder %s2410_s13, 1  ;;  %p1883_p3 = scmp.lt.s32.totalorder %s2320_s12, 2 }
  0x76   : > { %s2560_s14 = scalar_select %p32_p4, %s2316_s11, %s34_s20  }
  0x77   : > { %p2554_p10 = por %p2741_p6, %p41_p13  ;;  %p43_p5 = por %p42_p8, %p41_p13 }
  0x78   : > { %s329_s18 = sand.u32 1, %s2316_s11   ;;  %s1777_s27 = sshll.u32 %s2320_s12, 8 }
  0x79   : > { %s1640_s19 = sshll.u32 %s329_s18, 4  ;;  %s2567_s1 = scalar_lea.hbm %s2713_s0, %s1777_s27 }
  0x7a   : > { %s333_s24 = scalar_lea.vmem [#allocation2], %s1640_s19  ;;  %p2571_p11 = pnand %p1883_p3, %p43_p5 }
  0x7b   : > { %s340_s16 = sshll.u32 %s333_s24, 4  ;;  %s2575_s20 = scalar_lea.sflag [#allocation3], %s329_s18  ;;  %s2569_s16 = int_to_ptr.vmem [resolvable:$true] %s340_s16 }
  0x7c   : > { %s2216_s26 = scalar_lea.hbm %s2567_s1, 256  ;;  %p2218_p9 = pneg %p2571_p11 }
  0x7d   : > { %p2217_p7 = scmp.ne.s32.totalorder %s2567_s1, %s2216_s26  ;;  %s2221_s22 = scalar_lea.hbm %s2713_s0, 512 }
  0x7e   : > { %p2222_p2 = scmp.lt.u32.totalorder %s2567_s1, %s2713_s0  ;;  %p2223_p1 = scmp.lt.u32.totalorder %s2221_s22, %s2216_s26 }
  0x7f   : > { %p2219_p12 = pnand %p2218_p9, %p2217_p7  ;;  %p2225_p4 = scmp.lt.u32.totalorder %s2216_s26, %s2567_s1 }
  0x80   : > { %p2224_p13 = por %p2223_p1, %p2222_p2 }
  0x81   : > { %p2220_p0 = pneg %p2219_p12 }
  0x82   : > { %p2226_p8 = por %p2225_p4, %p2224_p13 }
  0x84   : > { %p2227_p6 = pnand %p2226_p8, %p2220_p0 }
  0x86   : > { %2230 = shalt.err (!%p2227_p6)
}
  0x87   : > { %s2231_s18 = scalar_lea.vmem %s2569_s16, 256  ;;  %s2332_s19 = smov [#allocation2]  }
  0x88   : > { %p2232_p3 = scmp.ne.s32.totalorder %s2569_s16, %s2231_s18  ;;  %s2236_s27 = sshll.u32 %s2332_s19, 4  ;;  %s2237_s27 = int_to_ptr.vmem [resolvable:$false] %s2236_s27 }
  0x89   : > { %s2238_s25 = scalar_lea.vmem %s2237_s27, 512  ;;  %p2239_p12 = scmp.lt.s32.totalorder %s2569_s16, %s2237_s27 }
  0x8a   : > { %p2234_p5 = pnand %p2232_p3, %p2218_p9  ;;  %p2240_p2 = scmp.lt.s32.totalorder %s2238_s25, %s2231_s18 }
  0x8c   : > { %p2235_p7 = pneg %p2234_p5  ;;  %p2241_p1 = por %p2240_p2, %p2239_p12 }
  0x8e   : > { %p2242_p13 = pnand %p2241_p1, %p2235_p7 }
  0x90   : > { %2245 = shalt.err (!%p2242_p13)
}
  0x91   : > { %1874 = dma.hbm_to_vmem [thread:$0]  (!%p2571_p11), %s2567_s1, 256, %s2569_s16, %s2575_s20, %s2329_s21, %s2329_s21, %s2330_s23  }
  0x92   : > { %p2744_p9 = scmp.ne.s32.totalorder %s2735_s17, 0 }
  0x93   : > { %s2609_s26 = sand.u32 (!%p2744_p9), 1, %s2312_s10   ;;  %p2745_p0 = scmp.ne.s32.totalorder (!%p2744_p9), %s2732_s15, 0 }
  0x94   : > { %352 = sbr.rel (%p2744_p9) target bundleno = 1158 (0x486), region = 56  ;;  %s1644_s22 = sshll.u32 (!%p2744_p9), %s2609_s26, 4 }
  0x95   : > { %s355_s24 = scalar_lea.sflag (!%p2744_p9), [#allocation3], %s2609_s26  ;;  %s2615_s30 = scalar_lea.vmem (!%p2744_p9), [#allocation2], %s1644_s22 }
  0x9b   : > { %2291 = dma.done.wait (%p2745_p0), %s355_s24, 256  }
  0x9c   : > { %2293 = vsyncadd (%p2745_p0), %s355_s24, 4294967040  ;;  %p2746_p11 = scmp.eq.s32.totalorder %s2410_s13, 0 }
  0x9e   : > { %2295 = dma.done.wait (%p2746_p11), [#allocation6], 12288   ;;  %p2747_p4 = pmov %p2746_p11 }
  0xa0   : > { %2297 = vsyncadd (%p2747_p4), [#allocation6], 4294955008  ;;  %p2748_p8 = pmov %p2747_p4 }
  0xa1   : > { %p2749_p6 = pmov %p2747_p4 }
  0xa2   : > { %2299 = dma.done.wait (%p2748_p8), [#allocation9], 3072  }
  0xa3   : > { %2301 = vsyncadd (%p2749_p6), [#allocation9], 4294964224  ;;  %v2333_v0 = vmov 0   ;;  %v1936_v1 = vld [vmem:[#allocation5 + $0x4] ss:$16 sps:$4 sm:$0xff]   ;;  %v413_v23 = vld [vmem:[%s2615_s30 + $0x8] sm:$0xff] }
  0xa4   : > { %661 = vmatprep.mubr.bf16.mxu1 %v2333_v0  ;;  %v1938_v2 = vld [vmem:[#allocation5] ss:$16 sps:$4 sm:$0xff]   ;;  %629 = vmatprep.subr.bf16.mxu1 %v1936_v1  ;;  %v1939_v3 = vld [vmem:[#allocation5 + $0x24] ss:$16 sps:$4 sm:$0xff]   ;;  %v1962_v24 = vld [vmem:[#allocation5 + $0xc] ss:$16 sps:$4 sm:$0xff]  }
  0xa5   : > { %630 = vmatpush1.bf16.msra.mxu1 %v1938_v2  ;;  %v1941_v4 = vld [vmem:[#allocation5 + $0x20] ss:$16 sps:$4 sm:$0xff]   ;;  %v1942_v5 = vld [vmem:[#allocation5 + $0x44] ss:$16 sps:$4 sm:$0xff]   ;;  %v1960_v28 = vld [vmem:[#allocation5 + $0x8] ss:$16 sps:$4 sm:$0xff]  }
  0xa6   : > { %631 = vmatprep.subr.bf16.mxu1 %v1939_v3  ;;  %v1944_v6 = vld [vmem:[#allocation5 + $0x40] ss:$16 sps:$4 sm:$0xff]   ;;  %v1945_v7 = vld [vmem:[#allocation5 + $0x64] ss:$16 sps:$4 sm:$0xff]   ;;  %v1965_v29 = vld [vmem:[#allocation5 + $0x2c] ss:$16 sps:$4 sm:$0xff]  }
  0xa7   : > { %v1947_v8 = vld [vmem:[#allocation5 + $0x60] ss:$16 sps:$4 sm:$0xff]   ;;  %v1948_v9 = vld [vmem:[#allocation5 + $0x84] ss:$16 sps:$4 sm:$0xff]   ;;  %v1963_v32 = vld [vmem:[#allocation5 + $0x28] ss:$16 sps:$4 sm:$0xff]  }
  0xa8   : > { %v1950_v10 = vld [vmem:[#allocation5 + $0x80] ss:$16 sps:$4 sm:$0xff]   ;;  %v1951_v11 = vld [vmem:[#allocation5 + $0xa4] ss:$16 sps:$4 sm:$0xff]   ;;  %v1968_v33 = vld [vmem:[#allocation5 + $0x4c] ss:$16 sps:$4 sm:$0xff]  }
  0xa9   : > { %632 = vmatpush1.bf16.msra.mxu1 %v1941_v4  ;;  %v1953_v12 = vld [vmem:[#allocation5 + $0xa0] ss:$16 sps:$4 sm:$0xff]   ;;  %v1954_v13 = vld [vmem:[#allocation5 + $0xc4] ss:$16 sps:$4 sm:$0xff]   ;;  %v1966_v36 = vld [vmem:[#allocation5 + $0x48] ss:$16 sps:$4 sm:$0xff]  }
  0xaa   : > { %633 = vmatprep.subr.bf16.mxu1 %v1942_v5  ;;  %v1956_v14 = vld [vmem:[#allocation5 + $0xc0] ss:$16 sps:$4 sm:$0xff]   ;;  %v1984_v15 = vld [vmem:[#allocation7 + $0x4] ss:$8 sps:$4 sm:$0xff]   ;;  %v1987_v18 = vld [vmem:[#allocation7 + $0x14] ss:$8 sps:$4 sm:$0xff]  }
  0xab   : > { %v1986_v16 = vld [vmem:[#allocation7] ss:$8 sps:$4 sm:$0xff]   ;;  %v1957_v17 = vld [vmem:[#allocation5 + $0xe4] ss:$16 sps:$4 sm:$0xff]   ;;  %1123 = vmatprep.subr.bf16.mxu0 %v1984_v15  ;;  %v1989_v21 = vld [vmem:[#allocation7 + $0x10] ss:$8 sps:$4 sm:$0xff]  }
  0xac   : > { %v1959_v19 = vld [vmem:[#allocation5 + $0xe0] ss:$16 sps:$4 sm:$0xff]   ;;  %1124 = vmatpush1.bf16.msra.mxu0 %v1986_v16  ;;  %v1990_v22 = vld [vmem:[#allocation7 + $0x24] ss:$8 sps:$4 sm:$0xff]   ;;  %v1993_v27 = vld [vmem:[#allocation7 + $0x34] ss:$8 sps:$4 sm:$0xff]   ;;  %v449_v16 = vlaneseq }
  0xad   : > { %634 = vmatpush1.bf16.msra.mxu1 %v1944_v6  ;;  %v412_v20 = vld [vmem:[%s2615_s30] sm:$0xff]  ;;  %1125 = vmatprep.subr.bf16.mxu0 %v1987_v18  ;;  %v1971_v37 = vld [vmem:[#allocation5 + $0x6c] ss:$16 sps:$4 sm:$0xff]   ;;  %v1969_v40 = vld [vmem:[#allocation5 + $0x68] ss:$16 sps:$4 sm:$0xff]   ;;  %vm2335_vm0 = vmmov 0  }
  0xae   : > { %635 = vmatprep.subr.bf16.mxu1 %v1945_v7  ;;  %v1992_v25 = vld [vmem:[#allocation7 + $0x20] ss:$8 sps:$4 sm:$0xff]   ;;  %v2631_v26 = vpack.c.bf16 %v413_v23, %v412_v20  ;;  %v1995_v30 = vld [vmem:[#allocation7 + $0x30] ss:$8 sps:$4 sm:$0xff]   ;;  %v1996_v31 = vld [vmem:[#allocation7 + $0x44] ss:$8 sps:$4 sm:$0xff]  }
  0xaf   : > { %v1998_v34 = vld [vmem:[#allocation7 + $0x40] ss:$8 sps:$4 sm:$0xff]   ;;  %v1999_v35 = vld [vmem:[#allocation7 + $0x54] ss:$8 sps:$4 sm:$0xff]   ;;  %v2001_v38 = vld [vmem:[#allocation7 + $0x50] ss:$8 sps:$4 sm:$0xff]  }
  0xb0   : > { %1126 = vmatpush1.bf16.msra.mxu0 %v1989_v21  ;;  %v2002_v39 = vld [vmem:[#allocation7 + $0x64] ss:$8 sps:$4 sm:$0xff]   ;;  %v2004_v42 = vld [vmem:[#allocation7 + $0x60] ss:$8 sps:$4 sm:$0xff]   ;;  %v2005_v43 = vld [vmem:[#allocation7 + $0x74] ss:$8 sps:$4 sm:$0xff]  }
  0xb1   : > { %636 = vmatpush1.bf16.msra.mxu1 %v1947_v8  ;;  %1127 = vmatprep.subr.bf16.mxu0 %v1990_v22  ;;  %v1974_v41 = vld [vmem:[#allocation5 + $0x8c] ss:$16 sps:$4 sm:$0xff]   ;;  %v1972_v44 = vld [vmem:[#allocation5 + $0x88] ss:$16 sps:$4 sm:$0xff]   ;;  %v2080_v5 = vld [vmem:[#allocation8 + $0x40] sm:$0xff]   ;;  %s408_s19 = scalar_lea.vmem [#allocation11], %s1644_s22 }
  0xb2   : > { %637 = vmatprep.subr.bf16.mxu1 %v1948_v9  ;;  %v1977_v45 = vld [vmem:[#allocation5 + $0xac] ss:$16 sps:$4 sm:$0xff]   ;;  %v2007_v46 = vld [vmem:[#allocation7 + $0x70] ss:$8 sps:$4 sm:$0xff]   ;;  %v2010_v50 = vld [vmem:[#allocation7 + $0x80] ss:$8 sps:$4 sm:$0xff]  }
  0xb3   : > { %v2008_v47 = vld [vmem:[#allocation7 + $0x84] ss:$8 sps:$4 sm:$0xff]   ;;  %v1975_v48 = vld [vmem:[#allocation5 + $0xa8] ss:$16 sps:$4 sm:$0xff]   ;;  %v2011_v51 = vld [vmem:[#allocation7 + $0x94] ss:$8 sps:$4 sm:$0xff]  }
  0xb4   : > { %1128 = vmatpush1.bf16.msra.mxu0 %v1992_v25  ;;  %v1980_v49 = vld [vmem:[#allocation5 + $0xcc] ss:$16 sps:$4 sm:$0xff]   ;;  %v1978_v52 = vld [vmem:[#allocation5 + $0xc8] ss:$16 sps:$4 sm:$0xff]   ;;  %v2081_v6 = vld [vmem:[#allocation8] sm:$0xff]   ;;  %s1522_s27 = sshll.u32 %s408_s19, 4  ;;  %s2664_s27 = int_to_ptr.vmem [resolvable:$true] %s1522_s27 }
  0xb5   : > { %638 = vmatpush1.bf16.msra.mxu1 %v1950_v10  ;;  %1129 = vmatprep.subr.bf16.mxu0 %v1993_v27  ;;  %v1983_v53 = vld [vmem:[#allocation5 + $0xec] ss:$16 sps:$4 sm:$0xff]   ;;  %v2013_v54 = vld [vmem:[#allocation7 + $0x90] ss:$8 sps:$4 sm:$0xff]   ;;  %v2016_v57 = vld [vmem:[#allocation7 + $0xa0] ss:$8 sps:$4 sm:$0xff]  }
  0xb6   : > { %639 = vmatprep.subr.bf16.mxu1 %v1951_v11  ;;  %v2014_v55 = vld [vmem:[#allocation7 + $0xa4] ss:$8 sps:$4 sm:$0xff]   ;;  %v1981_v56 = vld [vmem:[#allocation5 + $0xe8] ss:$16 sps:$4 sm:$0xff]   ;;  %v2017_v58 = vld [vmem:[#allocation7 + $0xb4] ss:$8 sps:$4 sm:$0xff]  }
  0xb7   : > { %v2019_v59 = vld [vmem:[#allocation7 + $0xb0] ss:$8 sps:$4 sm:$0xff]   ;;  %v2020_v60 = vld [vmem:[#allocation7 + $0xc4] ss:$8 sps:$4 sm:$0xff]   ;;  %v2022_v61 = vld [vmem:[#allocation7 + $0xc0] ss:$8 sps:$4 sm:$0xff]  }
  0xb8   : > { %1130 = vmatpush1.bf16.msra.mxu0 %v1995_v30  ;;  %v2023_v62 = vld [vmem:[#allocation7 + $0xd4] ss:$8 sps:$4 sm:$0xff]   ;;  %v2025_v63 = vld [vmem:[#allocation7 + $0xd0] ss:$8 sps:$4 sm:$0xff]   ;;  %v2028_v1 = vld [vmem:[#allocation7 + $0xe0] ss:$8 sps:$4 sm:$0xff]  }
  0xb9   : > { %640 = vmatpush1.bf16.msra.mxu1 %v1953_v12  ;;  %1131 = vmatprep.subr.bf16.mxu0 %v1996_v31  ;;  %v2029_v2 = vld [vmem:[#allocation7 + $0xf4] ss:$8 sps:$4 sm:$0xff]   ;;  %v2031_v3 = vld [vmem:[#allocation7 + $0xf0] ss:$8 sps:$4 sm:$0xff]   ;;  %v2034_v4 = vld [vmem:[#allocation7 + $0x104] ss:$8 sps:$4 sm:$0xff]  }
  0xba   : > { %641 = vmatprep.subr.bf16.mxu1 %v1954_v13  ;;  %v2082_v7 = vld [vmem:[#allocation8 + $0x48] sm:$0xff]   ;;  %v2084_v9 = vld [vmem:[#allocation8 + $0x50] sm:$0xff]   ;;  %v2086_v11 = vld [vmem:[#allocation8 + $0x58] sm:$0xff]   ;;  %s1778_s25 = sshll.u32 %s2410_s13, 8  ;;  %s1509_s22 = scalar_lea.sflag [#allocation4], %s2609_s26 }
  0xbb   : > { %v2083_v8 = vld [vmem:[#allocation8 + $0x8] sm:$0xff]   ;;  %v2085_v10 = vld [vmem:[#allocation8 + $0x10] sm:$0xff]   ;;  %v2087_v12 = vld [vmem:[#allocation8 + $0x18] sm:$0xff]   ;;  %s2669_s15 = scalar_lea.hbm %s2722_s9, %s1778_s25  ;;  %s2246_s13 = scalar_lea.vmem %s2664_s27, 256 }
  0xbc   : > { %1132 = vmatpush1.bf16.msra.mxu0 %v1998_v34  ;;  %v2088_v13 = vld [vmem:[#allocation8 + $0x60] sm:$0xff]   ;;  %v2090_v15 = vld [vmem:[#allocation8 + $0x68] sm:$0xff]   ;;  %p2247_p3 = scmp.ne.s32.totalorder %s2664_s27, %s2246_s13  ;;  %s2336_s17 = smov [#allocation11]  }
  0xbd   : > { %642 = vmatpush1.bf16.msra.mxu1 %v1956_v14  ;;  %1133 = vmatprep.subr.bf16.mxu0 %v1999_v35  ;;  %v2089_v14 = vld [vmem:[#allocation8 + $0x20] sm:$0xff]   ;;  %s2250_s21 = sshll.u32 %s2336_s17, 4  ;;  %s2251_s21 = int_to_ptr.vmem [resolvable:$false] %s2250_s21 }
  0xbe   : > { %643 = vmatprep.subr.bf16.mxu1 %v1957_v17  ;;  %v2635_v17 = vshrl.u32 %v449_v16, 7  ;;  %v2073_v16 = vld [vmem:[#allocation7 + $0x1d4] ss:$8 sps:$4 sm:$0xff]   ;;  %p2248_p5 = pnand %p2247_p3, %p2554_p10  ;;  %s2252_s23 = scalar_lea.vmem %s2251_s21, 512 }
  0xbf   : > { %p2253_p12 = scmp.lt.s32.totalorder %s2664_s27, %s2251_s21  ;;  %p2254_p2 = scmp.lt.s32.totalorder %s2252_s23, %s2246_s13 }
  0xc0   : > { %1134 = vmatpush1.bf16.msra.mxu0 %v2001_v38  ;;  %v451_v18 = vsub.s32 0, %v2635_v17  ;;  %v455_v20 = vsub.s32 1, %v2635_v17  ;;  %v2037_v38 = vld [vmem:[#allocation7 + $0x114] ss:$8 sps:$4 sm:$0xff]   ;;  %p2249_p7 = pneg %p2248_p5 }
  0xc1   : > { %644 = vmatpush1.bf16.msra.mxu1 %v1959_v19  ;;  %1135 = vmatprep.subr.bf16.mxu0 %v2002_v39  ;;  %v447_v19 = vld [vmem:[%s2715_s2] sm:$0xf]  ;;  %v2035_v39 = vld [vmem:[#allocation7 + $0x110] ss:$8 sps:$4 sm:$0xff]   ;;  %p2255_p1 = por %p2254_p2, %p2253_p12 }
  0xc2   : > { %672 = vmatprep.subr.bf16.mxu1 %v1962_v24  ;;  %v452_v21 = vrot.slane %v447_v19, %v451_v18  ;;  %v456_v22 = vrot.slane %v447_v19, %v455_v20 }
  0xc3   : > { %p2256_p13 = pnand %p2255_p1, %p2249_p7 }
  0xc4   : > { %662 = vmatmul.mubr.bf16.vlgmr.msra.gmra.mrb[0].mxu1 %v2631_v26  ;;  %1136 = vmatpush1.bf16.msra.mxu0 %v2004_v42  ;;  %v2043_v42 = vld [vmem:[#allocation7 + $0x134] ss:$8 sps:$4 sm:$0xff]  }
  0xc5   : > { %673 = vmatpush1.bf16.msra.mxu1 %v1960_v28  ;;  %704 = vmatprep.mubr.bf16.mxu1 %v2333_v0  ;;  %v2026_v0 = vld [vmem:[#allocation7 + $0xe4] ss:$8 sps:$4 sm:$0xff]  }
  0xc6   : > { %674 = vmatprep.subr.bf16.mxu1 %v1965_v29  ;;  %1137 = vmatprep.subr.bf16.mxu0 %v2005_v43  ;;  %v2041_v43 = vld [vmem:[#allocation7 + $0x130] ss:$8 sps:$4 sm:$0xff]  }
  0xc8   : > { %1138 = vmatpush1.bf16.msra.mxu0 %v2007_v46  ;;  %v2049_v46 = vld [vmem:[#allocation7 + $0x154] ss:$8 sps:$4 sm:$0xff]  }
  0xc9   : > { %675 = vmatpush1.bf16.msra.mxu1 %v1963_v32  ;;  %1139 = vmatprep.subr.bf16.mxu0 %v2008_v47  ;;  %v459_v47 = vsub.s32 2, %v2635_v17 }
  0xca   : > { %676 = vmatprep.subr.bf16.mxu1 %v1968_v33 }
  0xcc   : > { %1140 = vmatpush1.bf16.msra.mxu0 %v2010_v50  ;;  %v2052_v50 = vld [vmem:[#allocation7 + $0x164] ss:$8 sps:$4 sm:$0xff]  }
  0xcd   : > { %677 = vmatpush1.bf16.msra.mxu1 %v1966_v36  ;;  %1141 = vmatprep.subr.bf16.mxu0 %v2011_v51  ;;  %v460_v51 = vrot.slane %v447_v19, %v459_v47 }
  0xce   : > { %678 = vmatprep.subr.bf16.mxu1 %v1971_v37  ;;  %v2032_v37 = vld [vmem:[#allocation7 + $0x100] ss:$8 sps:$4 sm:$0xff]  }
  0xd0   : > { %1142 = vmatpush1.bf16.msra.mxu0 %v2013_v54 }
  0xd1   : > { %679 = vmatpush1.bf16.msra.mxu1 %v1969_v40  ;;  %1143 = vmatprep.subr.bf16.mxu0 %v2014_v55  ;;  %v2040_v40 = vld [vmem:[#allocation7 + $0x124] ss:$8 sps:$4 sm:$0xff]   ;;  %v2055_v55 = vld [vmem:[#allocation7 + $0x174] ss:$8 sps:$4 sm:$0xff]  }
  0xd2   : > { %680 = vmatprep.subr.bf16.mxu1 %v1974_v41  ;;  %v2038_v41 = vld [vmem:[#allocation7 + $0x120] ss:$8 sps:$4 sm:$0xff]  }
  0xd4   : > { %1144 = vmatpush1.bf16.msra.mxu0 %v2016_v57 }
  0xd5   : > { %681 = vmatpush1.bf16.msra.mxu1 %v1972_v44  ;;  %1145 = vmatprep.subr.bf16.mxu0 %v2017_v58  ;;  %v2046_v44 = vld [vmem:[#allocation7 + $0x144] ss:$8 sps:$4 sm:$0xff]  }
  0xd6   : > { %682 = vmatprep.subr.bf16.mxu1 %v1977_v45  ;;  %v2044_v45 = vld [vmem:[#allocation7 + $0x140] ss:$8 sps:$4 sm:$0xff]  }
  0xd8   : > { %1146 = vmatpush1.bf16.msra.mxu0 %v2019_v59 }
  0xd9   : > { %683 = vmatpush1.bf16.msra.mxu1 %v1975_v48  ;;  %1147 = vmatprep.subr.bf16.mxu0 %v2020_v60  ;;  %v463_v48 = vsub.s32 3, %v2635_v17  ;;  %v2097_v17 = vld [vmem:[#allocation10 + $0x8] sm:$0xff]  }
  0xda   : > { %684 = vmatprep.subr.bf16.mxu1 %v1980_v49  ;;  %v2047_v49 = vld [vmem:[#allocation7 + $0x150] ss:$8 sps:$4 sm:$0xff]  }
  0xdc   : > { %1148 = vmatpush1.bf16.msra.mxu0 %v2022_v61 }
  0xdd   : > { %685 = vmatpush1.bf16.msra.mxu1 %v1978_v52  ;;  %1149 = vmatprep.subr.bf16.mxu0 %v2023_v62  ;;  %v464_v52 = vrot.slane %v447_v19, %v463_v48  ;;  %v2071_v19 = vld [vmem:[#allocation7 + $0x1d0] ss:$8 sps:$4 sm:$0xff]   ;;  %v2096_v48 = vld [vmem:[#allocation10] sm:$0xff]  }
  0xde   : > { %686 = vmatprep.subr.bf16.mxu1 %v1983_v53  ;;  %v2050_v53 = vld [vmem:[#allocation7 + $0x160] ss:$8 sps:$4 sm:$0xff]  }
  0xe0   : > { %1150 = vmatpush1.bf16.msra.mxu0 %v2025_v63  ;;  %v2053_v63 = vld [vmem:[#allocation7 + $0x170] ss:$8 sps:$4 sm:$0xff]  }
  0xe1   : > { %687 = vmatpush1.bf16.msra.mxu1 %v1981_v56  ;;  %1151 = vmatprep.subr.bf16.mxu0 %v2026_v0 }
  0xe2   : > { %1779 = vmatprep.subr.bf16.mxu1 %v2080_v5 }
  0xe4   : > { %705 = vmatmul.mubr.bf16.vlgmr.msra.gmra.mrb[4].mxu1 %v2631_v26  ;;  %1152 = vmatpush1.bf16.msra.mxu0 %v2028_v1 }
  0xe5   : > { %1153 = vmatprep.subr.bf16.mxu0 %v2029_v2  ;;  %1780 = vmatpush3.bf16.msra.mxu1 %v2081_v6  ;;  %v2058_v2 = vld [vmem:[#allocation7 + $0x184] ss:$8 sps:$4 sm:$0xff]   ;;  %v2056_v6 = vld [vmem:[#allocation7 + $0x180] ss:$8 sps:$4 sm:$0xff]  }
  0xe6   : > { %1781 = vmatprep.subr.bf16.mxu1 %v2082_v7 }
  0xe8   : > { %1154 = vmatpush1.bf16.msra.mxu0 %v2031_v3 }
  0xe9   : > { %1166 = vmatprep.subr.bf16.mxu0 %v2034_v4  ;;  %1782 = vmatpush3.bf16.msra.mxu1 %v2083_v8  ;;  %v2061_v8 = vld [vmem:[#allocation7 + $0x194] ss:$8 sps:$4 sm:$0xff]  }
  0xea   : > { %1783 = vmatprep.subr.bf16.mxu1 %v2084_v9  ;;  %v2059_v9 = vld [vmem:[#allocation7 + $0x190] ss:$8 sps:$4 sm:$0xff]  }
  0xed   : > { %1784 = vmatpush3.bf16.msra.mxu1 %v2085_v10  ;;  %v2064_v10 = vld [vmem:[#allocation7 + $0x1a4] ss:$8 sps:$4 sm:$0xff]  }
  0xee   : > { %1785 = vmatprep.subr.bf16.mxu1 %v2086_v11  ;;  %v2062_v11 = vld [vmem:[#allocation7 + $0x1a0] ss:$8 sps:$4 sm:$0xff]  }
  0xf1   : > { %1786 = vmatpush3.bf16.msra.mxu1 %v2087_v12  ;;  %v2067_v12 = vld [vmem:[#allocation7 + $0x1b4] ss:$8 sps:$4 sm:$0xff]  }
  0xf2   : > { %1787 = vmatprep.subr.bf16.mxu1 %v2088_v13  ;;  %v2065_v13 = vld [vmem:[#allocation7 + $0x1b0] ss:$8 sps:$4 sm:$0xff]  }
  0xf5   : > { %1788 = vmatpush3.bf16.msra.mxu1 %v2089_v14  ;;  %v2070_v14 = vld [vmem:[#allocation7 + $0x1c4] ss:$8 sps:$4 sm:$0xff]  }
  0xf6   : > { %1789 = vmatprep.subr.bf16.mxu1 %v2090_v15  ;;  %v2068_v15 = vld [vmem:[#allocation7 + $0x1c0] ss:$8 sps:$4 sm:$0xff]  }
 0x197   : > { %v663_v23 = vpop.f32.mrb[0].mxu1 }
 0x198   : > { %v664_v24 = vadd.f32 %v663_v23, %v452_v21  ;;  %v665_v25 = vpop.f32.mrb[1].mxu1  ;;  %v2079_v23 = vld [vmem:[#allocation7 + $0x1f4] ss:$8 sps:$4 sm:$0xff]  }
 0x199   : > { %v666_v26 = vadd.f32 %v665_v25, %v456_v22  ;;  %v667_v27 = vpop.f32.mrb[2].mxu1  ;;  %v2091_v25 = vld [vmem:[#allocation8 + $0x28] sm:$0xff]  }
 0x19a   : > { %v668_v28 = vadd.f32 %v667_v27, %v452_v21  ;;  %v669_v29 = vpop.f32.mrb[3].mxu1  ;;  %v715_v31 = vmax.f32 %v664_v24, 0.0  ;;  %v2076_v21 = vld [vmem:[#allocation7 + $0x1e4] ss:$8 sps:$4 sm:$0xff]   ;;  %v2077_v24 = vld [vmem:[#allocation7 + $0x1f0] ss:$8 sps:$4 sm:$0xff]   ;;  %1790 = vmatpush3.bf16.msra.mxu1 %v2091_v25 }
 0x19b   : > { %v670_v30 = vadd.f32 %v669_v29, %v456_v22  ;;  %v716_v33 = vmax.f32 %v666_v26, 0.0  ;;  %v2074_v22 = vld [vmem:[#allocation7 + $0x1e0] ss:$8 sps:$4 sm:$0xff]   ;;  %v2092_v26 = vld [vmem:[#allocation8 + $0x70] sm:$0xff]   ;;  %v2095_v29 = vld [vmem:[#allocation8 + $0x38] sm:$0xff]  }
 0x19c   : > { %v719_v32 = vmax.f32 %v668_v28, 0.0  ;;  %v2093_v27 = vld [vmem:[#allocation8 + $0x30] sm:$0xff]   ;;  %1791 = vmatprep.subr.bf16.mxu1 %v2092_v26  ;;  %v2094_v28 = vld [vmem:[#allocation8 + $0x78] sm:$0xff]  }
 0x19d   : > { %v720_v34 = vmax.f32 %v670_v30, 0.0  ;;  %v2334_v30 = vmov 0.0  }
 0x19e   : > { %v723_v35 = vpack.c.bf16 %v719_v32, %v715_v31  ;;  %1792 = vmatpush3.bf16.msra.mxu1 %v2093_v27  ;;  %v791_v31 = vld [vmem:[%s2717_s4] sm:$0x3] }
 0x19f   : > { %v724_v36 = vpack.c.bf16 %v720_v34, %v716_v33  ;;  %1793 = vmatprep.subr.bf16.mxu1 %v2094_v28  ;;  %v796_v32 = vrot.slane %v791_v31, %v451_v18  ;;  %v800_v33 = vrot.slane %v791_v31, %v455_v20  ;;  %v2098_v18 = vld [vmem:[#allocation10 + $0x10] sm:$0xff]   ;;  %v2099_v20 = vld [vmem:[#allocation10 + $0x18] sm:$0xff]  }
 0x1a1   : > { %1155 = vmatprep.mubr.bf16.mxu0 %v724_v36 }
 0x1a2   : > { %1156 = vmatmul.mubr.bf16.vlgmr.msra.gmra.mrb[0].mxu0 %v723_v35  ;;  %1794 = vmatpush3.bf16.msra.mxu1 %v2095_v29 }
 0x1a3   : > { %1167 = vmatpush1.bf16.msra.mxu0 %v2032_v37  ;;  %1810 = vmatprep.subr.bf16.mxu1 %v2334_v30 }
 0x1a4   : > { %1168 = vmatprep.subr.bf16.mxu0 %v2037_v38 }
 0x1a7   : > { %1169 = vmatpush1.bf16.msra.mxu0 %v2035_v39 }
 0x1a8   : > { %1170 = vmatprep.subr.bf16.mxu0 %v2040_v40 }
 0x1ab   : > { %1171 = vmatpush1.bf16.msra.mxu0 %v2038_v41 }
 0x1ac   : > { %1172 = vmatprep.subr.bf16.mxu0 %v2043_v42 }
 0x1af   : > { %1173 = vmatpush1.bf16.msra.mxu0 %v2041_v43 }
 0x1b0   : > { %1174 = vmatprep.subr.bf16.mxu0 %v2046_v44 }
 0x1b3   : > { %1175 = vmatpush1.bf16.msra.mxu0 %v2044_v45 }
 0x1b4   : > { %1176 = vmatprep.subr.bf16.mxu0 %v2049_v46 }
 0x1b7   : > { %1177 = vmatpush1.bf16.msra.mxu0 %v2047_v49  ;;  %v706_v54 = vpop.f32.mrb[4].mxu1  ;;  %v2100_v49 = vld [vmem:[#allocation10 + $0x20] sm:$0xff]  }
 0x1b8   : > { %1178 = vmatprep.subr.bf16.mxu0 %v2052_v50  ;;  %v707_v56 = vadd.f32 %v706_v54, %v460_v51  ;;  %v708_v57 = vpop.f32.mrb[5].mxu1  ;;  %v2101_v50 = vld [vmem:[#allocation10 + $0x28] sm:$0xff]   ;;  %v1746_v54 = vld [vmem:[%s2719_s6] ss:$0 sm:$0xff] }
 0x1b9   : > { %v709_v58 = vadd.f32 %v708_v57, %v464_v52  ;;  %v710_v59 = vpop.f32.mrb[6].mxu1 }
 0x1ba   : > { %v717_v60 = vmax.f32 %v707_v56, 0.0  ;;  %v711_v61 = vadd.f32 %v710_v59, %v460_v51  ;;  %v712_v62 = vpop.f32.mrb[7].mxu1  ;;  %v2102_v51 = vld [vmem:[#allocation10 + $0x30] sm:$0xff]  }
 0x1bb   : > { %1179 = vmatpush1.bf16.msra.mxu0 %v2050_v53  ;;  %v718_v0 = vmax.f32 %v709_v58, 0.0  ;;  %v713_v1 = vadd.f32 %v712_v62, %v464_v52  ;;  %v2103_v52 = vld [vmem:[#allocation10 + $0x38] sm:$0xff]  }
 0x1bc   : > { %1180 = vmatprep.subr.bf16.mxu0 %v2055_v55  ;;  %v721_v3 = vmax.f32 %v711_v61, 0.0 }
 0x1bd   : > { %v722_v4 = vmax.f32 %v713_v1, 0.0  ;;  %v1763_v1 = vld [vmem:[%s2721_s8] ss:$0 sm:$0xff] }
 0x1be   : > { %v725_v5 = vpack.c.bf16 %v721_v3, %v717_v60 }
 0x1bf   : > { %1181 = vmatpush1.bf16.msra.mxu0 %v2053_v63  ;;  %v726_v7 = vpack.c.bf16 %v722_v4, %v718_v0 }
 0x1c0   : > { %1182 = vmatprep.subr.bf16.mxu0 %v2058_v2 }
 0x1c1   : > { %1198 = vmatprep.mubr.bf16.mxu0 %v726_v7 }
 0x1c3   : > { %1183 = vmatpush1.bf16.msra.mxu0 %v2056_v6 }
 0x1c4   : > { %1184 = vmatprep.subr.bf16.mxu0 %v2061_v8 }
 0x1c7   : > { %1185 = vmatpush1.bf16.msra.mxu0 %v2059_v9 }
 0x1c8   : > { %1186 = vmatprep.subr.bf16.mxu0 %v2064_v10 }
 0x1cb   : > { %1187 = vmatpush1.bf16.msra.mxu0 %v2062_v11 }
 0x1cc   : > { %1188 = vmatprep.subr.bf16.mxu0 %v2067_v12 }
 0x1cf   : > { %1189 = vmatpush1.bf16.msra.mxu0 %v2065_v13 }
 0x1d0   : > { %1190 = vmatprep.subr.bf16.mxu0 %v2070_v14 }
 0x1d3   : > { %1191 = vmatpush1.bf16.msra.mxu0 %v2068_v15 }
 0x1d4   : > { %1192 = vmatprep.subr.bf16.mxu0 %v2073_v16 }
 0x1d7   : > { %1193 = vmatpush1.bf16.msra.mxu0 %v2071_v19 }
 0x1d8   : > { %1194 = vmatprep.subr.bf16.mxu0 %v2076_v21 }
 0x1db   : > { %1195 = vmatpush1.bf16.msra.mxu0 %v2074_v22 }
 0x1dc   : > { %1196 = vmatprep.subr.bf16.mxu0 %v2079_v23 }
 0x1df   : > { %1197 = vmatpush1.bf16.msra.mxu0 %v2077_v24 }
 0x1e2   : > { %1199 = vmatmul.mubr.bf16.vlgmr.msra.gmra.mrb[0].mxu0 %v725_v5 }
 0x2b5   : > { %v1200_v34 = vpop.f32.mrb[0].mxu0 }
 0x2b6   : > { %v1830_v35 = vadd.f32 %v1200_v34, %v796_v32  ;;  %v1202_v36 = vpop.f32.mrb[1].mxu0 }
 0x2b7   : > { %v1831_v37 = vadd.f32 %v1202_v36, %v800_v33  ;;  %v1204_v38 = vpop.f32.mrb[2].mxu0 }
 0x2b8   : > { %v1832_v39 = vadd.f32 %v1204_v38, %v796_v32  ;;  %v1206_v40 = vpop.f32.mrb[3].mxu0  ;;  %v1209_v42 = vmax.f32 %v1830_v35, 0.0 }
 0x2b9   : > { %v1833_v41 = vadd.f32 %v1206_v40, %v800_v33  ;;  %v1210_v44 = vmax.f32 %v1831_v37, 0.0 }
 0x2ba   : > { %v1211_v43 = vmax.f32 %v1832_v39, 0.0 }
 0x2bb   : > { %v1212_v45 = vmax.f32 %v1833_v41, 0.0 }
 0x2bc   : > { %v1213_v46 = vpack.c.bf16 %v1211_v43, %v1209_v42 }
 0x2bd   : > { %v1214_v47 = vpack.c.bf16 %v1212_v45, %v1210_v44 }
 0x2bf   : > { %1382 = vmatprep.mubr.bf16.mxu1 %v1214_v47 }
 0x2c0   : > { %1383 = vmatmul.mubr.bf16.vlgmr.msra.gmra.mrb[8].mxu1 %v1213_v46 }
 0x2c1   : > { %1811 = vmatpush3.bf16.msra.mxu1 %v2096_v48  ;;  %1826 = vmatprep.mubr.msk.bf16.mxu1 %vm2335_vm0, %v2334_v30 }
 0x2c2   : > { %1812 = vmatprep.subr.bf16.mxu1 %v2334_v30 }
 0x2c5   : > { %1813 = vmatpush3.bf16.msra.mxu1 %v2097_v17 }
 0x2c6   : > { %1814 = vmatprep.subr.bf16.mxu1 %v2334_v30 }
 0x2c9   : > { %1815 = vmatpush3.bf16.msra.mxu1 %v2098_v18 }
 0x2ca   : > { %1816 = vmatprep.subr.bf16.mxu1 %v2334_v30 }
 0x2cd   : > { %1817 = vmatpush3.bf16.msra.mxu1 %v2099_v20 }
 0x2ce   : > { %1818 = vmatprep.subr.bf16.mxu1 %v2334_v30 }
 0x2d1   : > { %1819 = vmatpush3.bf16.msra.mxu1 %v2100_v49 }
 0x2d2   : > { %1820 = vmatprep.subr.bf16.mxu1 %v2334_v30 }
 0x2d5   : > { %1821 = vmatpush3.bf16.msra.mxu1 %v2101_v50 }
 0x2d6   : > { %1822 = vmatprep.subr.bf16.mxu1 %v2334_v30 }
 0x2d9   : > { %1823 = vmatpush3.bf16.msra.mxu1 %v2102_v51 }
 0x2da   : > { %1824 = vmatprep.subr.bf16.mxu1 %v2334_v30 }
 0x2dd   : > { %1825 = vmatpush3.bf16.msra.mxu1 %v2103_v52 }
 0x393   : > { %v1795_v53 = vpop.f32.mrb[8].mxu1 }
 0x394   : > { %v1796_v55 = vpop.f32.mrb[9].mxu1 }
 0x395   : > { %v1797_v56 = vadd.f32 %v1796_v55, %v1795_v53  ;;  %v1798_v57 = vpop.f32.mrb[10].mxu1 }
 0x396   : > { %v1799_v58 = vpop.f32.mrb[11].mxu1 }
 0x397   : > { %v1385_v59 = vadd.f32 %v1797_v56, %v1746_v54  ;;  %v1800_v60 = vadd.f32 %v1799_v58, %v1798_v57 }
 0x399   : > { %v1388_v61 = vadd.f32 %v1800_v60, %v1746_v54  ;;  %v1391_v62 = vmax.f32 %v1385_v59, 0.0 }
 0x39b   : > { %v1392_v63 = vmax.f32 %v1388_v61, 0.0 }
 0x39d   : > { %v1393_v0 = vpack.c.bf16 %v1392_v63, %v1391_v62 }
 0x39f   : > { %1827 = vmatmul.mubr.bf16.vlgmr.msra.gmra.mrb[12].mxu1 %v1393_v0 }
 0x472   : > { %v1499_v2 = vpop.f32.mrb[12].mxu1 }
 0x473   : > { %v1500_v3 = vadd.f32 %v1763_v1, %v1499_v2  ;;  %v1828_v4 = vpop.f32.mrb[13].mxu1 }
 0x474   : > { %v1502_v5 = vpop.f32.mrb[14].mxu1 }
 0x475   : > { %1506 = vst [vmem:[%s408_s19] sm:$0xff] %v1500_v3  ;;  %v1503_v6 = vadd.f32 %v1763_v1, %v1502_v5  ;;  %v1829_v7 = vpop.f32.mrb[15].mxu1 }
 0x477   : > { %1507 = vst [vmem:[%s408_s19 + $0x8] sm:$0xff] %v1503_v6 }
 0x478   : > { %2259 = shalt.err (!%p2256_p13)
}
 0x479   : > { %s2260_s1 = scalar_lea.hbm %s2669_s15, 256  ;;  %s2264_s18 = scalar_lea.hbm %s2722_s9, 512 }
 0x47a   : > { %p2261_p9 = scmp.ne.s32.totalorder %s2669_s15, %s2260_s1  ;;  %p2265_p4 = scmp.lt.u32.totalorder %s2669_s15, %s2722_s9 }
 0x47b   : > { %p2266_p8 = scmp.lt.u32.totalorder %s2264_s18, %s2260_s1  ;;  %p2268_p3 = scmp.lt.u32.totalorder %s2260_s1, %s2669_s15 }
 0x47c   : > { %p2262_p0 = pnand %p2261_p9, %p2554_p10 }
 0x47d   : > { %p2267_p6 = por %p2266_p8, %p2265_p4 }
 0x47e   : > { %p2263_p11 = pneg %p2262_p0 }
 0x47f   : > { %p2269_p5 = por %p2268_p3, %p2267_p6 }
 0x481   : > { %p2270_p7 = pnand %p2269_p5, %p2263_p11 }
 0x483   : > { %2273 = shalt.err (!%p2270_p7)
}
 0x484   : > { %s2337_s24 = smov 128   ;;  %s2338_s30 = smov 8  }
 0x485   : > { %1856 = dma.vmem_to_hbm [thread:$0]  (%p2554_p10), %s2664_s27, 256, %s2669_s15, %s1509_s22, %s2337_s24, %s2337_s24, %s2338_s30  }
 0x486 PF: > { %s2750_s13 = sld [smem:[#allocation16_spill]]  ;;  %s2751_s17 = sld [smem:[#allocation17_spill]] }
 0x487   : > { %p2753_p2 = scmp.ge.s32.totalorder %s2320_s12, 2 }
 0x48c   : > { %s1537_s21 = sand.u32 1, %s2750_s13   ;;  %p2752_p12 = scmp.ne.s32.totalorder %s2751_s17, 0 }
 0x48d   : > { %s1538_s23 = scalar_lea.sflag [#allocation4], %s1537_s21 }
 0x48e   : > { %p1876_p1 = pnand %p2753_p2, %p2752_p12 }
 0x490   : > { %2303 = dma.done.wait (!%p1876_p1), %s1538_s23, 256  }
 0x491   : > { %2305 = vsyncadd (!%p1876_p1), %s1538_s23, 4294967040  ;;  %p24_p13 = scmp.ge.s32.totalorder %s2544_s28, 4   ;;  %s2754_s30 = smov %s2312_s10 }
 0x492   : > { %s2755_s10 = smov %s2316_s11  ;;  %s2756_s11 = smov %s2560_s14 }
 0x493   : > { %s2757_s12 = smov %s2544_s28  ;;  %26 = sbr.rel (!%p24_p13) target bundleno = 9 (0x9), region = 117 }
 0x49a   :  { %1543 = vsyncpa [#allocation3], 1 }
 0x49b   :  { %1545 = vsyncpa [#allocation3 + $0x1], 1 }
 0x49c   :  { %1546 = vsyncpa [#allocation6], 1 }
 0x49d   :  { %1547 = vsyncpa [#allocation9], 1 }
 0x49e   :  { %1548 = vsyncpa [#allocation4], 1 }
 0x49f   :  { %1550 = vsyncpa [#allocation4 + $0x1], 1 }

</bundles_post_ra>
